<compile_context>
chip_gen: v7x
topology: tpu7x:2x2x1
jax: 0.10.0
libtpu: 0.0.40
codegen_flags: <defaults>
</compile_context>

<pallas_src>
import jax
import jax.numpy as jnp
from jax.experimental import pallas as pl
from jax.experimental.pallas import tpu as pltpu  # noqa: F401  (TPU backend)


def add_relu_conv1x1_kernel(w_ref, a_ref, b_ref, o_ref):
    # w_ref: (Cout, Cin)   a_ref, b_ref: (Cin, HW)   o_ref: (Cout, HW)
    x = jnp.maximum(a_ref[...] + b_ref[...], 0.0)
    o_ref[...] = jnp.dot(
        w_ref[...], x, preferred_element_type=jnp.float32
    ).astype(o_ref.dtype)


def add_relu_conv1x1(x201, x209, weight):
    """x201, x209: (1, C_in, H, W) float32; weight: (C_out, C_in, 1, 1)."""
    N, Cin, H, W = x201.shape
    Cout = weight.shape[0]
    assert N == 1, "NCHW-native path assumes batch == 1 (as in the module)"
    HW = N * H * W

    # NCHW -> (Cin, HW): contiguous merge of trailing dims, no data movement.
    a = x201.reshape(Cin, HW)
    b = x209.reshape(Cin, HW)
    # (Cout, Cin, 1, 1) -> (Cout, Cin): contiguous reshape, no transpose.
    w_mat = weight.reshape(Cout, Cin)

    cost = pl.CostEstimate(
        flops=2 * Cout * Cin * HW + 2 * Cin * HW,
        transcendentals=0,
        bytes_accessed=(2 * Cin * HW + Cout * Cin + Cout * HW) * 4,
    )

    out_mat = pl.pallas_call(
        add_relu_conv1x1_kernel,
        out_shape=jax.ShapeDtypeStruct((Cout, HW), jnp.float32),
        in_specs=[
            pl.BlockSpec((Cout, Cin), lambda: (0, 0)),
            pl.BlockSpec((Cin, HW), lambda: (0, 0)),
            pl.BlockSpec((Cin, HW), lambda: (0, 0)),
        ],
        out_specs=pl.BlockSpec((Cout, HW), lambda: (0, 0)),
        cost_estimate=cost,
    )(w_mat, a, b)

    # (Cout, HW) -> (1, Cout, H, W): contiguous split, no data movement.
    return out_mat.reshape(N, Cout, H, W)


if __name__ == "__main__":
    key = jax.random.PRNGKey(0)
    k1, k2, k3 = jax.random.split(key, 3)

    N, C, H, W = 1, 400, 7, 7  # shapes from the PyTorch module
    x201 = jax.random.normal(k1, (N, C, H, W), dtype=jnp.float32)
    x209 = jax.random.normal(k2, (N, C, H, W), dtype=jnp.float32)
    # Conv2d(400, 400, kernel_size=1, bias=False) weight, deterministic init
    weight = jax.random.normal(k3, (C, C, 1, 1), dtype=jnp.float32) * (1.0 / C) ** 0.5

    out = add_relu_conv1x1(x201, x209, weight)
    out = jax.block_until_ready(out)

    # Cross-check against plain-JAX reference of the same math.
    ref = jnp.einsum(
        "nchw,oc->nohw",
        jnp.maximum(x201 + x209, 0.0),
        weight.reshape(C, C),
    )
    assert out.shape == (N, C, H, W)
    assert jnp.allclose(out, ref, atol=1e-4, rtol=1e-4)

    print("KERNEL_OK")
</pallas_src>

<mosaic_0001>
module attributes {stable_mosaic.version = 11 : i64} {
  func.func @add_relu_conv1x1_kernel(%arg0: memref<400x400xf32, #tpu.memory_space<vmem>>, %arg1: memref<400x49xf32, #tpu.memory_space<vmem>>, %arg2: memref<400x49xf32, #tpu.memory_space<vmem>>, %arg3: memref<400x49xf32, #tpu.memory_space<vmem>>) attributes {dimension_semantics = [], scalar_prefetch = 0 : i64, scratch_operands = 0 : i64, tpu.core_type = #tpu.core_type<tc>} {
    %c0 = arith.constant 0 : index
    %c0_0 = arith.constant 0 : index
    %0 = vector.load %arg1[%c0, %c0_0] : memref<400x49xf32, #tpu.memory_space<vmem>>, vector<400x49xf32>
    %c0_1 = arith.constant 0 : index
    %c0_2 = arith.constant 0 : index
    %1 = vector.load %arg2[%c0_1, %c0_2] : memref<400x49xf32, #tpu.memory_space<vmem>>, vector<400x49xf32>
    %2 = arith.addf %0, %1 : vector<400x49xf32>
    %cst = arith.constant 0.000000e+00 : f32
    %3 = vector.broadcast %cst : f32 to vector<400x49xf32>
    %4 = arith.maximumf %2, %3 : vector<400x49xf32>
    %c0_3 = arith.constant 0 : index
    %c0_4 = arith.constant 0 : index
    %5 = vector.load %arg0[%c0_3, %c0_4] : memref<400x400xf32, #tpu.memory_space<vmem>>, vector<400x400xf32>
    %cst_5 = arith.constant dense<0.000000e+00> : vector<400x49xf32>
    %6 = tpu.matmul %5, %4, %cst_5 {dimension_numbers = #tpu.dot_dimension_numbers<[1], [0], [0], [1], [0, 0, 1, 1], [], []>} : vector<400x400xf32>, vector<400x49xf32>, vector<400x49xf32> -> vector<400x49xf32>
    %c0_6 = arith.constant 0 : index
    %c0_7 = arith.constant 0 : index
    %7 = vector.load %arg3[%c0_6, %c0_7] : memref<400x49xf32, #tpu.memory_space<vmem>>, vector<400x49xf32>
    tpu.vector_store %arg3[%c0_6, %c0_7], %6 {strides = array<i32>} : memref<400x49xf32, #tpu.memory_space<vmem>>, vector<400x49xf32>,
    return
  }
}

</mosaic_0001>

<bundles_post_ra>
// kernel: tpu_custom_call.1
= control target key start
LH: loop header
LB: loop body
LE: loop exit
PB: predicated region body
PF: predicated region fallthrough
CT: control target
= control target key end

     0   :  { %8 = vsyncpa [#allocation3], 0  ;;  %s1468_s12 = smov [#allocation2]   ;;  %s2082_s0 = inlined_call_operand.hbm [shape: f32[400,400], index: 0, kind: input, shape index: {}]   ;;  %s2083_s1 = inlined_call_operand.vmem [shape: f32[400,49], index: 1, kind: input, shape index: {}]   ;;  %s2084_s2 = inlined_call_operand.vmem [shape: f32[400,49], index: 2, kind: input, shape index: {}]   ;;  %s2085_s3 = inlined_call_operand.vmem [shape: f32[400,49], index: 3, kind: output, shape index: {}]  }
   0x1   :  { %s14_s13 = sshll.u32 %s1468_s12, 4  ;;  %s1444_s16 = scalar_lea.hbm %s2082_s0, 25600  ;;  %s15_s13 = int_to_ptr.vmem [resolvable:$true] %s14_s13 }
   0x2   :  { %p1445_p0 = scmp.ne.s32.totalorder %s2082_s0, %s1444_s16  ;;  %p1448_p1 = scmp.lt.u32.totalorder %s1444_s16, %s2082_s0 }
   0x4   :  { %p1450_p2 = pnand %p1448_p1, %p1445_p0 }
   0x6   :  { %1453 = shalt.err (!%p1450_p2)
}
   0x7   :  { %s1454_s21 = scalar_lea.vmem %s15_s13, 25600  ;;  %p1459_p4 = scmp.lt.s32.totalorder %s15_s13, %s15_s13 }
   0x8   :  { %p1455_p3 = scmp.ne.s32.totalorder %s15_s13, %s1454_s21  ;;  %p1460_p5 = scmp.lt.s32.totalorder %s1454_s21, %s1454_s21 }
   0xa   :  { %p1461_p6 = por %p1460_p5, %p1459_p4 }
   0xc   :  { %p1462_p7 = pnand %p1461_p6, %p1455_p3 }
   0xe   :  { %1465 = shalt.err (!%p1462_p7)
}
   0xf   :  { %s1469_s22 = smov 512   ;;  %s1470_s23 = smov 32  }
  0x10   :  { %20 = dma.hbm_to_vmem [thread:$0]  %s2082_s0, 25600, %s15_s13, [#allocation3], %s1469_s22, %s1469_s22, %s1470_s23  }
  0x11   :  { %1466 = dma.done.wait [#allocation3], 25600  }
  0x12   :  { %1467 = vsyncadd [#allocation3], 4294941696  ;;  %v1471_v0 = vmov 0.0|0.0   ;;  %v28_v1 = vld [vmem:[%s2083_s1] sm:$0xff]  ;;  %v29_v2 = vld [vmem:[%s2083_s1 + $0x8] sm:$0xff]  ;;  %vm428_vm0 = vcmask 130048  }
  0x13   :  { %1315 = vmatprep.subr.bf16.mxu1 %v1471_v0  ;;  %1363 = vmatprep.subr.bf16.mxu0 %v1471_v0  ;;  %v78_v3 = vld [vmem:[%s2084_s2] sm:$0xff]  ;;  %v79_v4 = vld [vmem:[%s2084_s2 + $0x8] sm:$0xff]  ;;  %v30_v6 = vld [vmem:[%s2083_s1 + $0x10] sm:$0xff]  ;;  %vm1209_vm1 = vcmask 400384  }
  0x14   :  { %v128_v5 = vadd.f32 %v78_v3, %v28_v1  ;;  %v31_v7 = vld [vmem:[%s2083_s1 + $0x18] sm:$0xff]  ;;  %v129_v8 = vadd.f32 %v79_v4, %v29_v2  ;;  %v80_v9 = vld [vmem:[%s2084_s2 + $0x10] sm:$0xff]  ;;  %v32_v11 = vld [vmem:[%s2083_s1 + $0x20] sm:$0xff] }
  0x15   :  { %v81_v10 = vld [vmem:[%s2084_s2 + $0x18] sm:$0xff]  ;;  %v130_v13 = vadd.f32 %v80_v9, %v30_v6  ;;  %v33_v15 = vld [vmem:[%s2083_s1 + $0x28] sm:$0xff]  ;;  %v82_v16 = vld [vmem:[%s2084_s2 + $0x20] sm:$0xff] }
  0x16   :  { %v178_v12 = vmax.f32 %v128_v5, 0.0  ;;  %v131_v14 = vadd.f32 %v81_v10, %v31_v7  ;;  %v83_v17 = vld [vmem:[%s2084_s2 + $0x28] sm:$0xff]  ;;  %v179_v18 = vmax.f32 %v129_v8, 0.0  ;;  %v132_v19 = vadd.f32 %v82_v16, %v32_v11  ;;  %v34_v21 = vld [vmem:[%s2083_s1 + $0x30] sm:$0xff]  ;;  %v35_v25 = vld [vmem:[%s2083_s1 + $0x38] sm:$0xff] }
  0x17   :  { %v133_v20 = vadd.f32 %v83_v17, %v33_v15  ;;  %v84_v22 = vld [vmem:[%s2084_s2 + $0x30] sm:$0xff]  ;;  %v180_v23 = vmax.f32 %v130_v13, 0.0  ;;  %v85_v26 = vld [vmem:[%s2084_s2 + $0x38] sm:$0xff]  ;;  %v36_v29 = vld [vmem:[%s2083_s1 + $0x40] sm:$0xff] }
  0x18   :  { %v181_v24 = vmax.f32 %v131_v14, 0.0  ;;  %v1316_v27 = vpack.c.bf16 %v179_v18, %v178_v12  ;;  %v134_v28 = vadd.f32 %v84_v22, %v34_v21  ;;  %v182_v31 = vmax.f32 %v132_v19, 0.0  ;;  %v37_v34 = vld [vmem:[%s2083_s1 + $0x48] sm:$0xff]  ;;  %v86_v35 = vld [vmem:[%s2084_s2 + $0x40] sm:$0xff]  ;;  %v38_v39 = vld [vmem:[%s2083_s1 + $0x50] sm:$0xff] }
  0x19   :  { %v183_v32 = vmax.f32 %v133_v20, 0.0  ;;  %v135_v33 = vadd.f32 %v85_v26, %v35_v25  ;;  %v87_v36 = vld [vmem:[%s2084_s2 + $0x48] sm:$0xff]  ;;  %v60_v37 = vld [vmem:[%s2083_s1 + $0x100] sm:$0xff]  ;;  %v136_v42 = vadd.f32 %v86_v35, %v36_v29  ;;  %v39_v44 = vld [vmem:[%s2083_s1 + $0x58] sm:$0xff] }
  0x1a   :  { %1317 = vmatpush1.bf16.msra.mxu1 %v1316_v27  ;;  %v1319_v30 = vpack.c.bf16 %v181_v24, %v180_v23  ;;  %v61_v38 = vld [vmem:[%s2083_s1 + $0x108] sm:$0xff]  ;;  %v110_v40 = vld [vmem:[%s2084_s2 + $0x100] sm:$0xff]  ;;  %v137_v43 = vadd.f32 %v87_v36, %v37_v34  ;;  %v88_v45 = vld [vmem:[%s2084_s2 + $0x50] sm:$0xff]  ;;  %v184_v50 = vmax.f32 %v134_v28, 0.0 }
  0x1b   :  { %1318 = vmatprep.subr.bf16.mxu1 %v1471_v0  ;;  %v111_v41 = vld [vmem:[%s2084_s2 + $0x108] sm:$0xff]  ;;  %v89_v46 = vld [vmem:[%s2084_s2 + $0x58] sm:$0xff]  ;;  %v160_v47 = vadd.f32 %v110_v40, %v60_v37  ;;  %v1322_v49 = vpack.c.bf16 %v183_v32, %v182_v31  ;;  %v185_v51 = vmax.f32 %v135_v33, 0.0  ;;  %v62_v52 = vld [vmem:[%s2083_s1 + $0x110] sm:$0xff]  ;;  %v1604_v59 = vadd.f32 %v88_v45, %v38_v39 }
  0x1c   :  { %v161_v48 = vadd.f32 %v111_v41, %v61_v38  ;;  %v63_v53 = vld [vmem:[%s2083_s1 + $0x118] sm:$0xff]  ;;  %v112_v54 = vld [vmem:[%s2084_s2 + $0x110] sm:$0xff]  ;;  %v139_v60 = vadd.f32 %v89_v46, %v39_v44  ;;  %v64_v62 = vld [vmem:[%s2083_s1 + $0x120] sm:$0xff]  ;;  %v186_v63 = vmax.f32 %v136_v42, 0.0  ;;  %v187_v1 = vmax.f32 %v137_v43, 0.0 }
  0x1d   :  { %v210_v55 = vmax.f32 %v160_v47, 0.0  ;;  %v113_v57 = vld [vmem:[%s2084_s2 + $0x118] sm:$0xff]  ;;  %v162_v58 = vadd.f32 %v112_v54, %v62_v52  ;;  %v65_v4 = vld [vmem:[%s2083_s1 + $0x128] sm:$0xff]  ;;  %v114_v5 = vld [vmem:[%s2084_s2 + $0x120] sm:$0xff]  ;;  %v1325_v7 = vpack.c.bf16 %v185_v51, %v184_v50 }
  0x1e   :  { %1320 = vmatpush1.bf16.msra.mxu1 %v1319_v30  ;;  %v211_v56 = vmax.f32 %v161_v48, 0.0  ;;  %v163_v61 = vadd.f32 %v113_v57, %v63_v53  ;;  %v115_v6 = vld [vmem:[%s2084_s2 + $0x128] sm:$0xff]  ;;  %v40_v8 = vld [vmem:[%s2083_s1 + $0x60] sm:$0xff]  ;;  %v164_v12 = vadd.f32 %v114_v5, %v64_v62  ;;  %v66_v15 = vld [vmem:[%s2083_s1 + $0x130] sm:$0xff]  ;;  %v1328_v29 = vpack.c.bf16 %v187_v1, %v186_v63 }
  0x1f   :  { %1321 = vmatprep.subr.bf16.mxu1 %v1471_v0  ;;  %v212_v3 = vmax.f32 %v162_v58, 0.0  ;;  %v41_v9 = vld [vmem:[%s2083_s1 + $0x68] sm:$0xff]  ;;  %v90_v10 = vld [vmem:[%s2084_s2 + $0x60] sm:$0xff]  ;;  %v165_v13 = vadd.f32 %v115_v6, %v65_v4  ;;  %v67_v16 = vld [vmem:[%s2083_s1 + $0x138] sm:$0xff]  ;;  %v188_v30 = vmax.f32 %v1604_v59, 0.0  ;;  %v189_v31 = vmax.f32 %v139_v60, 0.0 }
  0x20   :  { %v1364_v2 = vpack.c.bf16 %v211_v56, %v210_v55  ;;  %v213_v11 = vmax.f32 %v163_v61, 0.0  ;;  %v91_v14 = vld [vmem:[%s2084_s2 + $0x68] sm:$0xff]  ;;  %v42_v17 = vld [vmem:[%s2083_s1 + $0x70] sm:$0xff]  ;;  %v214_v19 = vmax.f32 %v164_v12, 0.0  ;;  %v117_v22 = vld [vmem:[%s2084_s2 + $0x138] sm:$0xff]  ;;  %v140_v23 = vadd.f32 %v90_v10, %v40_v8 }
  0x21   :  { %v215_v20 = vmax.f32 %v165_v13, 0.0  ;;  %v116_v21 = vld [vmem:[%s2084_s2 + $0x130] sm:$0xff]  ;;  %v43_v24 = vld [vmem:[%s2083_s1 + $0x78] sm:$0xff]  ;;  %v167_v28 = vadd.f32 %v117_v22, %v67_v16  ;;  %v141_v32 = vadd.f32 %v91_v14, %v41_v9  ;;  %v68_v33 = vld [vmem:[%s2083_s1 + $0x140] sm:$0xff] }
  0x22   :  { %1323 = vmatpush1.bf16.msra.mxu1 %v1322_v49  ;;  %1365 = vmatpush1.bf16.msra.mxu0 %v1364_v2  ;;  %v1367_v18 = vpack.c.bf16 %v213_v11, %v212_v3  ;;  %v92_v25 = vld [vmem:[%s2084_s2 + $0x70] sm:$0xff]  ;;  %v93_v26 = vld [vmem:[%s2084_s2 + $0x78] sm:$0xff]  ;;  %v166_v27 = vadd.f32 %v116_v21, %v66_v15  ;;  %v69_v34 = vld [vmem:[%s2083_s1 + $0x148] sm:$0xff]  ;;  %v1331_v49 = vpack.c.bf16 %v189_v31, %v188_v30  ;;  %v190_v50 = vmax.f32 %v140_v23, 0.0 }
  0x23   :  { %1324 = vmatprep.subr.bf16.mxu1 %v1471_v0  ;;  %1366 = vmatprep.subr.bf16.mxu0 %v1471_v0  ;;  %v118_v35 = vld [vmem:[%s2084_s2 + $0x140] sm:$0xff]  ;;  %v1370_v36 = vpack.c.bf16 %v215_v20, %v214_v19  ;;  %v217_v38 = vmax.f32 %v167_v28, 0.0  ;;  %v119_v39 = vld [vmem:[%s2084_s2 + $0x148] sm:$0xff]  ;;  %v70_v43 = vld [vmem:[%s2083_s1 + $0x150] sm:$0xff]  ;;  %v142_v44 = vadd.f32 %v92_v25, %v42_v17  ;;  %v143_v45 = vadd.f32 %v93_v26, %v43_v24 }
  0x24   :  { %v216_v37 = vmax.f32 %v166_v27, 0.0  ;;  %v168_v40 = vadd.f32 %v118_v35, %v68_v33  ;;  %v44_v41 = vld [vmem:[%s2083_s1 + $0x80] sm:$0xff]  ;;  %v169_v42 = vadd.f32 %v119_v39, %v69_v34  ;;  %v71_v46 = vld [vmem:[%s2083_s1 + $0x158] sm:$0xff]  ;;  %v120_v47 = vld [vmem:[%s2084_s2 + $0x150] sm:$0xff]  ;;  %v191_v51 = vmax.f32 %v141_v32, 0.0 }
  0x25   :  { %v121_v48 = vld [vmem:[%s2084_s2 + $0x158] sm:$0xff]  ;;  %v45_v52 = vld [vmem:[%s2083_s1 + $0x88] sm:$0xff]  ;;  %v94_v53 = vld [vmem:[%s2084_s2 + $0x80] sm:$0xff]  ;;  %v170_v58 = vadd.f32 %v120_v47, %v70_v43  ;;  %v192_v1 = vmax.f32 %v142_v44, 0.0  ;;  %v193_v2 = vmax.f32 %v143_v45, 0.0 }
  0x26   :  { %1326 = vmatpush1.bf16.msra.mxu1 %v1325_v7  ;;  %1368 = vmatpush1.bf16.msra.mxu0 %v1367_v18  ;;  %v95_v54 = vld [vmem:[%s2084_s2 + $0x88] sm:$0xff]  ;;  %v1373_v55 = vpack.c.bf16 %v217_v38, %v216_v37  ;;  %v218_v56 = vmax.f32 %v168_v40, 0.0  ;;  %v219_v57 = vmax.f32 %v169_v42, 0.0  ;;  %v171_v59 = vadd.f32 %v121_v48, %v71_v46  ;;  %v72_v60 = vld [vmem:[%s2083_s1 + $0x160] sm:$0xff]  ;;  %v46_v6 = vld [vmem:[%s2083_s1 + $0x90] sm:$0xff] }
  0x27   :  { %1327 = vmatprep.subr.bf16.mxu1 %v1471_v0  ;;  %1369 = vmatprep.subr.bf16.mxu0 %v1471_v0  ;;  %v73_v61 = vld [vmem:[%s2083_s1 + $0x168] sm:$0xff]  ;;  %v122_v62 = vld [vmem:[%s2084_s2 + $0x160] sm:$0xff]  ;;  %v144_v3 = vadd.f32 %v94_v53, %v44_v41  ;;  %v145_v4 = vadd.f32 %v95_v54, %v45_v52  ;;  %v1334_v5 = vpack.c.bf16 %v191_v51, %v190_v50  ;;  %v47_v7 = vld [vmem:[%s2083_s1 + $0x98] sm:$0xff]  ;;  %v220_v13 = vmax.f32 %v170_v58, 0.0 }
  0x28   :  { %v123_v63 = vld [vmem:[%s2084_s2 + $0x168] sm:$0xff]  ;;  %v172_v8 = vadd.f32 %v122_v62, %v72_v60  ;;  %v96_v10 = vld [vmem:[%s2084_s2 + $0x90] sm:$0xff]  ;;  %v97_v11 = vld [vmem:[%s2084_s2 + $0x98] sm:$0xff]  ;;  %v1376_v12 = vpack.c.bf16 %v219_v57, %v218_v56  ;;  %v221_v14 = vmax.f32 %v171_v59, 0.0  ;;  %v1337_v19 = vpack.c.bf16 %v193_v2, %v192_v1 }
  0x29   :  { %v173_v9 = vadd.f32 %v123_v63, %v73_v61  ;;  %v74_v15 = vld [vmem:[%s2083_s1 + $0x170] sm:$0xff]  ;;  %v75_v16 = vld [vmem:[%s2083_s1 + $0x178] sm:$0xff]  ;;  %v194_v20 = vmax.f32 %v144_v3, 0.0  ;;  %v195_v21 = vmax.f32 %v145_v4, 0.0  ;;  %v48_v22 = vld [vmem:[%s2083_s1 + $0xa0] sm:$0xff]  ;;  %v146_v23 = vadd.f32 %v96_v10, %v46_v6 }
  0x2a   :  { %1329 = vmatpush1.bf16.msra.mxu1 %v1328_v29  ;;  %1371 = vmatpush1.bf16.msra.mxu0 %v1370_v36  ;;  %v124_v17 = vld [vmem:[%s2084_s2 + $0x170] sm:$0xff]  ;;  %v125_v18 = vld [vmem:[%s2084_s2 + $0x178] sm:$0xff]  ;;  %v147_v24 = vadd.f32 %v97_v11, %v47_v7  ;;  %v49_v25 = vld [vmem:[%s2083_s1 + $0xa8] sm:$0xff]  ;;  %v222_v28 = vmax.f32 %v172_v8, 0.0  ;;  %v1379_v30 = vpack.c.bf16 %v221_v14, %v220_v13 }
  0x2b   :  { %1330 = vmatprep.subr.bf16.mxu1 %v1471_v0  ;;  %1372 = vmatprep.subr.bf16.mxu0 %v1471_v0  ;;  %v98_v26 = vld [vmem:[%s2084_s2 + $0xa0] sm:$0xff]  ;;  %v99_v27 = vld [vmem:[%s2084_s2 + $0xa8] sm:$0xff]  ;;  %v223_v29 = vmax.f32 %v173_v9, 0.0  ;;  %v174_v31 = vadd.f32 %v124_v17, %v74_v15  ;;  %v175_v32 = vadd.f32 %v125_v18, %v75_v16  ;;  %v231_v34 = vld [vmem:[#allocation2 + $0x18] sm:$0xff]  ;;  %v1340_v41 = vpack.c.bf16 %v195_v21, %v194_v20 }
  0x2c   :  { %v76_v33 = vld [vmem:[%s2083_s1 + $0x180] sm:$0xff]  ;;  %v229_v35 = vld [vmem:[#allocation2 + $0x8] sm:$0xff]  ;;  %1265 = vmatprep.mubr.msk.f32.mxu0 %vm428_vm0, %v231_v34  ;;  %v148_v39 = vadd.f32 %v98_v26, %v48_v22  ;;  %v149_v40 = vadd.f32 %v99_v27, %v49_v25  ;;  %v196_v42 = vmax.f32 %v146_v23, 0.0  ;;  %v197_v43 = vmax.f32 %v147_v24, 0.0  ;;  %v50_v44 = vld [vmem:[%s2083_s1 + $0xb0] sm:$0xff] }
  0x2d   :  { %v77_v36 = vld [vmem:[%s2083_s1 + $0x188] sm:$0xff]  ;;  %v126_v37 = vld [vmem:[%s2084_s2 + $0x180] sm:$0xff]  ;;  %643 = vmatprep.mubr.f32.mxu1 %v229_v35  ;;  %v1382_v45 = vpack.c.bf16 %v223_v29, %v222_v28  ;;  %v51_v46 = vld [vmem:[%s2083_s1 + $0xb8] sm:$0xff]  ;;  %v225_v50 = vmax.f32 %v175_v32, 0.0 }
  0x2e   :  { %1332 = vmatpush1.bf16.msra.mxu1 %v1331_v49  ;;  %1374 = vmatpush1.bf16.msra.mxu0 %v1373_v55  ;;  %v127_v38 = vld [vmem:[%s2084_s2 + $0x188] sm:$0xff]  ;;  %v100_v47 = vld [vmem:[%s2084_s2 + $0xb0] sm:$0xff]  ;;  %v101_v48 = vld [vmem:[%s2084_s2 + $0xb8] sm:$0xff]  ;;  %v224_v49 = vmax.f32 %v174_v31, 0.0  ;;  %v176_v51 = vadd.f32 %v126_v37, %v76_v33  ;;  %v198_v53 = vmax.f32 %v148_v39, 0.0  ;;  %v199_v54 = vmax.f32 %v149_v40, 0.0 }
  0x2f   :  { %1333 = vmatprep.subr.bf16.mxu1 %v1471_v0  ;;  %1375 = vmatprep.subr.bf16.mxu0 %v1471_v0  ;;  %v177_v52 = vadd.f32 %v127_v38, %v77_v36  ;;  %v1343_v55 = vpack.c.bf16 %v197_v43, %v196_v42  ;;  %v150_v56 = vadd.f32 %v100_v47, %v50_v44  ;;  %v52_v58 = vld [vmem:[%s2083_s1 + $0xc0] sm:$0xff]  ;;  %v53_v59 = vld [vmem:[%s2083_s1 + $0xc8] sm:$0xff]  ;;  %v54_v3 = vld [vmem:[%s2083_s1 + $0xd0] sm:$0xff] }
  0x30   :  { %v151_v57 = vadd.f32 %v101_v48, %v51_v46  ;;  %v102_v60 = vld [vmem:[%s2084_s2 + $0xc0] sm:$0xff]  ;;  %v103_v61 = vld [vmem:[%s2084_s2 + $0xc8] sm:$0xff]  ;;  %v1385_v62 = vpack.c.bf16 %v225_v50, %v224_v49  ;;  %v226_v63 = vmax.f32 %v176_v51, 0.0  ;;  %v1346_v2 = vpack.c.bf16 %v199_v54, %v198_v53  ;;  %v55_v8 = vld [vmem:[%s2083_s1 + $0xd8] sm:$0xff] }
  0x31   :  { %v227_v1 = vmax.f32 %v177_v52, 0.0  ;;  %v200_v4 = vmax.f32 %v150_v56, 0.0  ;;  %v152_v6 = vadd.f32 %v102_v60, %v52_v58  ;;  %v153_v7 = vadd.f32 %v103_v61, %v53_v59  ;;  %v104_v9 = vld [vmem:[%s2084_s2 + $0xd0] sm:$0xff]  ;;  %v105_v10 = vld [vmem:[%s2084_s2 + $0xd8] sm:$0xff]  ;;  %v56_v17 = vld [vmem:[%s2083_s1 + $0xe0] sm:$0xff] }
  0x32   :  { %1335 = vmatpush1.bf16.msra.mxu1 %v1334_v5  ;;  %1377 = vmatpush1.bf16.msra.mxu0 %v1376_v12  ;;  %v201_v5 = vmax.f32 %v151_v57, 0.0  ;;  %v154_v12 = vadd.f32 %v104_v9, %v54_v3  ;;  %v155_v13 = vadd.f32 %v105_v10, %v55_v8  ;;  %v57_v18 = vld [vmem:[%s2083_s1 + $0xe8] sm:$0xff]  ;;  %v230_v21 = vld [vmem:[#allocation2 + $0x10] sm:$0xff]  ;;  %v235_v22 = vld [vmem:[#allocation2 + $0x38] sm:$0xff] }
  0x33   :  { %1336 = vmatprep.subr.bf16.mxu1 %v1471_v0  ;;  %1378 = vmatprep.subr.bf16.mxu0 %v1471_v0  ;;  %v1388_v11 = vpack.c.bf16 %v227_v1, %v226_v63  ;;  %v202_v15 = vmax.f32 %v152_v6, 0.0  ;;  %v203_v16 = vmax.f32 %v153_v7, 0.0  ;;  %v107_v20 = vld [vmem:[%s2084_s2 + $0xe8] sm:$0xff]  ;;  %v58_v28 = vld [vmem:[%s2083_s1 + $0xf0] sm:$0xff]  ;;  %v59_v29 = vld [vmem:[%s2083_s1 + $0xf8] sm:$0xff] }
  0x34   :  { %v1349_v14 = vpack.c.bf16 %v201_v5, %v200_v4  ;;  %v204_v23 = vmax.f32 %v154_v12, 0.0  ;;  %v205_v24 = vmax.f32 %v155_v13, 0.0  ;;  %v157_v27 = vadd.f32 %v107_v20, %v57_v18  ;;  %v109_v31 = vld [vmem:[%s2084_s2 + $0xf8] sm:$0xff]  ;;  %v234_v32 = vld [vmem:[#allocation2 + $0x30] sm:$0xff]  ;;  %v228_v49 = vld [vmem:[#allocation2] sm:$0xff] }
  0x35   :  { %v1352_v25 = vpack.c.bf16 %v203_v16, %v202_v15  ;;  %v239_v33 = vld [vmem:[#allocation2 + $0x58] sm:$0xff]  ;;  %v159_v38 = vadd.f32 %v109_v31, %v59_v29  ;;  %v238_v39 = vld [vmem:[#allocation2 + $0x50] sm:$0xff]  ;;  %v233_v50 = vld [vmem:[#allocation2 + $0x28] sm:$0xff] }
  0x36   :  { %1338 = vmatpush1.bf16.msra.mxu1 %v1337_v19  ;;  %1380 = vmatpush1.bf16.msra.mxu0 %v1379_v30  ;;  %v106_v19 = vld [vmem:[%s2084_s2 + $0xe0] sm:$0xff]  ;;  %v108_v30 = vld [vmem:[%s2084_s2 + $0xf0] sm:$0xff]  ;;  %v1355_v34 = vpack.c.bf16 %v205_v24, %v204_v23  ;;  %v207_v36 = vmax.f32 %v157_v27, 0.0  ;;  %v243_v40 = vld [vmem:[#allocation2 + $0x78] sm:$0xff] }
  0x37   :  { %1339 = vmatprep.subr.bf16.mxu1 %v1471_v0  ;;  %1381 = vmatprep.subr.bf16.mxu0 %v1471_v0  ;;  %v156_v26 = vadd.f32 %v106_v19, %v56_v17  ;;  %v158_v37 = vadd.f32 %v108_v30, %v58_v28  ;;  %v209_v43 = vmax.f32 %v159_v38, 0.0  ;;  %v242_v44 = vld [vmem:[#allocation2 + $0x70] sm:$0xff]  ;;  %v251_v48 = vld [vmem:[#allocation2 + $0xb8] sm:$0xff]  ;;  %v232_v53 = vld [vmem:[#allocation2 + $0x20] sm:$0xff] }
  0x38   :  { %v246_v47 = vld [vmem:[#allocation2 + $0x90] sm:$0xff]  ;;  %v255_v52 = vld [vmem:[#allocation2 + $0xd8] sm:$0xff]  ;;  %v237_v54 = vld [vmem:[#allocation2 + $0x48] sm:$0xff] }
  0x39   :  { %v206_v35 = vmax.f32 %v156_v26, 0.0  ;;  %v208_v42 = vmax.f32 %v158_v37, 0.0  ;;  %v250_v51 = vld [vmem:[#allocation2 + $0xb0] sm:$0xff]  ;;  %v236_v56 = vld [vmem:[#allocation2 + $0x40] sm:$0xff]  ;;  %v241_v57 = vld [vmem:[#allocation2 + $0x68] sm:$0xff] }
  0x3a   :  { %1341 = vmatpush1.bf16.msra.mxu1 %v1340_v41  ;;  %1383 = vmatpush1.bf16.msra.mxu0 %v1382_v45  ;;  %v247_v45 = vld [vmem:[#allocation2 + $0x98] sm:$0xff]  ;;  %v258_v58 = vld [vmem:[#allocation2 + $0xf0] sm:$0xff]  ;;  %v240_v60 = vld [vmem:[#allocation2 + $0x60] sm:$0xff] }
  0x3b   :  { %1342 = vmatprep.subr.bf16.mxu1 %v1471_v0  ;;  %1384 = vmatprep.subr.bf16.mxu0 %v1471_v0  ;;  %v1358_v41 = vpack.c.bf16 %v207_v36, %v206_v35  ;;  %v1361_v46 = vpack.c.bf16 %v209_v43, %v208_v42  ;;  %v263_v59 = vld [vmem:[#allocation2 + $0x118] sm:$0xff]  ;;  %v245_v61 = vld [vmem:[#allocation2 + $0x88] sm:$0xff]  ;;  %v244_v1 = vld [vmem:[#allocation2 + $0x80] sm:$0xff] }
  0x3c   :  { %v267_v63 = vld [vmem:[#allocation2 + $0x138] sm:$0xff]  ;;  %v266_v3 = vld [vmem:[#allocation2 + $0x130] sm:$0xff]  ;;  %v248_v5 = vld [vmem:[#allocation2 + $0xa0] sm:$0xff] }
  0x3d   :  { %v271_v4 = vld [vmem:[#allocation2 + $0x158] sm:$0xff]  ;;  %v253_v6 = vld [vmem:[#allocation2 + $0xc8] sm:$0xff]  ;;  %v270_v7 = vld [vmem:[#allocation2 + $0x150] sm:$0xff] }
  0x3e   :  { %1344 = vmatpush1.bf16.msra.mxu1 %v1343_v55  ;;  %1386 = vmatpush1.bf16.msra.mxu0 %v1385_v62  ;;  %v259_v55 = vld [vmem:[#allocation2 + $0xf8] sm:$0xff]  ;;  %v262_v62 = vld [vmem:[#allocation2 + $0x110] sm:$0xff]  ;;  %v252_v9 = vld [vmem:[#allocation2 + $0xc0] sm:$0xff] }
  0x3f   :  { %1345 = vmatprep.subr.bf16.mxu1 %v1471_v0  ;;  %1387 = vmatprep.subr.bf16.mxu0 %v1471_v0  ;;  %v275_v8 = vld [vmem:[#allocation2 + $0x178] sm:$0xff]  ;;  %v257_v10 = vld [vmem:[#allocation2 + $0xe8] sm:$0xff]  ;;  %v256_v13 = vld [vmem:[#allocation2 + $0xe0] sm:$0xff] }
  0x40   :  { %v279_v12 = vld [vmem:[#allocation2 + $0x198] sm:$0xff]  ;;  %v278_v15 = vld [vmem:[#allocation2 + $0x190] sm:$0xff]  ;;  %v260_v17 = vld [vmem:[#allocation2 + $0x100] sm:$0xff] }
  0x41   :  { %v283_v16 = vld [vmem:[#allocation2 + $0x1b8] sm:$0xff]  ;;  %v265_v18 = vld [vmem:[#allocation2 + $0x128] sm:$0xff]  ;;  %v282_v19 = vld [vmem:[#allocation2 + $0x1b0] sm:$0xff] }
  0x42   :  { %1347 = vmatpush1.bf16.msra.mxu1 %v1346_v2  ;;  %1389 = vmatpush1.bf16.msra.mxu0 %v1388_v11  ;;  %v249_v2 = vld [vmem:[#allocation2 + $0xa8] sm:$0xff]  ;;  %v274_v11 = vld [vmem:[#allocation2 + $0x170] sm:$0xff]  ;;  %v287_v20 = vld [vmem:[#allocation2 + $0x1d8] sm:$0xff] }
  0x43   :  { %1348 = vmatprep.subr.bf16.mxu1 %v1471_v0  ;;  %v286_v23 = vld [vmem:[#allocation2 + $0x1d0] sm:$0xff]  ;;  %v291_v24 = vld [vmem:[#allocation2 + $0x1f8] sm:$0xff]  ;;  %v273_v26 = vld [vmem:[#allocation2 + $0x168] sm:$0xff] }
  0x44   :  { %v290_v27 = vld [vmem:[#allocation2 + $0x1f0] sm:$0xff]  ;;  %v295_v28 = vld [vmem:[#allocation2 + $0x218] sm:$0xff]  ;;  %v272_v29 = vld [vmem:[#allocation2 + $0x160] sm:$0xff] }
  0x45   :  { %959 = vmatmul.mubr.f32.vlgmr.msra.gmra.mrb[0].mxu0 %v230_v21  ;;  %v264_v21 = vld [vmem:[#allocation2 + $0x120] sm:$0xff]  ;;  %v277_v30 = vld [vmem:[#allocation2 + $0x188] sm:$0xff]  ;;  %v294_v31 = vld [vmem:[#allocation2 + $0x210] sm:$0xff] }
  0x46   :  { %1350 = vmatpush1.bf16.msra.mxu1 %v1349_v14  ;;  %1266 = vmatprep.mubr.msk.f32.mxu0 %vm428_vm0, %v235_v22  ;;  %v261_v14 = vld [vmem:[#allocation2 + $0x108] sm:$0xff]  ;;  %v298_v35 = vld [vmem:[#allocation2 + $0x230] sm:$0xff]  ;;  %v303_v36 = vld [vmem:[#allocation2 + $0x258] sm:$0xff] }
  0x47   :  { %1351 = vmatprep.subr.bf16.mxu1 %v1471_v0  ;;  %v269_v22 = vld [vmem:[#allocation2 + $0x148] sm:$0xff]  ;;  %v280_v37 = vld [vmem:[#allocation2 + $0x1a0] sm:$0xff]  ;;  %v306_v43 = vld [vmem:[#allocation2 + $0x270] sm:$0xff] }
  0x48   :  { %v285_v38 = vld [vmem:[#allocation2 + $0x1c8] sm:$0xff] }
  0x49   :  { %964 = vmatmul.mubr.f32.gmra.mrb[2].mxu0 %v234_v32  ;;  %v299_v32 = vld [vmem:[#allocation2 + $0x238] sm:$0xff]  ;;  %v289_v42 = vld [vmem:[#allocation2 + $0x1e8] sm:$0xff] }
  0x4a   :  { %1353 = vmatpush1.bf16.msra.mxu1 %v1352_v25  ;;  %1267 = vmatprep.mubr.msk.f32.mxu0 %vm428_vm0, %v239_v33  ;;  %v268_v25 = vld [vmem:[#allocation2 + $0x140] sm:$0xff] }
  0x4b   :  { %1354 = vmatprep.subr.bf16.mxu1 %v1471_v0  ;;  %v276_v33 = vld [vmem:[#allocation2 + $0x180] sm:$0xff] }
  0x4d   :  { %969 = vmatmul.mubr.f32.gmra.mrb[4].mxu0 %v238_v39  ;;  %v302_v39 = vld [vmem:[#allocation2 + $0x250] sm:$0xff] }
  0x4e   :  { %1356 = vmatpush1.bf16.msra.mxu1 %v1355_v34  ;;  %1268 = vmatprep.mubr.msk.f32.mxu0 %vm428_vm0, %v243_v40  ;;  %v281_v34 = vld [vmem:[#allocation2 + $0x1a8] sm:$0xff]  ;;  %v307_v40 = vld [vmem:[#allocation2 + $0x278] sm:$0xff] }
  0x4f   :  { %1357 = vmatprep.subr.bf16.mxu1 %v1471_v0 }
  0x51   :  { %974 = vmatmul.mubr.f32.gmra.mrb[6].mxu0 %v242_v44  ;;  %v311_v44 = vld [vmem:[#allocation2 + $0x298] sm:$0xff] }
  0x52   :  { %1359 = vmatpush1.bf16.msra.mxu1 %v1358_v41  ;;  %1269 = vmatprep.mubr.msk.f32.mxu0 %vm428_vm0, %v247_v45  ;;  %v284_v41 = vld [vmem:[#allocation2 + $0x1c0] sm:$0xff] }
  0x53   :  { %1360 = vmatprep.subr.bf16.mxu1 %v1471_v0  ;;  %v254_v0 = vld [vmem:[#allocation2 + $0xd0] sm:$0xff]  ;;  %v288_v45 = vld [vmem:[#allocation2 + $0x1e0] sm:$0xff] }
  0x55   :  { %979 = vmatmul.mubr.f32.gmra.mrb[8].mxu0 %v246_v47  ;;  %v310_v47 = vld [vmem:[#allocation2 + $0x290] sm:$0xff] }
  0x56   :  { %1362 = vmatpush1.bf16.msra.mxu1 %v1361_v46  ;;  %1270 = vmatprep.mubr.msk.f32.mxu0 %vm428_vm0, %v251_v48  ;;  %v293_v46 = vld [vmem:[#allocation2 + $0x208] sm:$0xff]  ;;  %v315_v48 = vld [vmem:[#allocation2 + $0x2b8] sm:$0xff] }
  0x59   :  { %644 = vmatmul.mubr.f32.vlgmr.msra.gmra.mrb[0].mxu1 %v228_v49  ;;  %984 = vmatmul.mubr.f32.gmra.mrb[10].mxu0 %v250_v51  ;;  %v292_v49 = vld [vmem:[#allocation2 + $0x200] sm:$0xff]  ;;  %v314_v51 = vld [vmem:[#allocation2 + $0x2b0] sm:$0xff] }
  0x5a   :  { %648 = vmatprep.mubr.f32.mxu1 %v233_v50  ;;  %1271 = vmatprep.mubr.msk.f32.mxu0 %vm428_vm0, %v255_v52  ;;  %v297_v50 = vld [vmem:[#allocation2 + $0x228] sm:$0xff]  ;;  %v319_v52 = vld [vmem:[#allocation2 + $0x2d8] sm:$0xff] }
  0x5d   :  { %649 = vmatmul.mubr.f32.gmra.mrb[2].mxu1 %v232_v53  ;;  %989 = vmatmul.mubr.f32.gmra.mrb[12].mxu0 %v254_v0  ;;  %v296_v53 = vld [vmem:[#allocation2 + $0x220] sm:$0xff]  ;;  %v318_v0 = vld [vmem:[#allocation2 + $0x2d0] sm:$0xff] }
  0x5e   :  { %653 = vmatprep.mubr.f32.mxu1 %v237_v54  ;;  %1272 = vmatprep.mubr.msk.f32.mxu0 %vm428_vm0, %v259_v55  ;;  %v301_v54 = vld [vmem:[#allocation2 + $0x248] sm:$0xff]  ;;  %v323_v55 = vld [vmem:[#allocation2 + $0x2f8] sm:$0xff] }
  0x61   :  { %654 = vmatmul.mubr.f32.gmra.mrb[4].mxu1 %v236_v56  ;;  %994 = vmatmul.mubr.f32.gmra.mrb[14].mxu0 %v258_v58  ;;  %v300_v56 = vld [vmem:[#allocation2 + $0x240] sm:$0xff]  ;;  %v322_v58 = vld [vmem:[#allocation2 + $0x2f0] sm:$0xff] }
  0x62   :  { %658 = vmatprep.mubr.f32.mxu1 %v241_v57  ;;  %1273 = vmatprep.mubr.msk.f32.mxu0 %vm428_vm0, %v263_v59  ;;  %v305_v57 = vld [vmem:[#allocation2 + $0x268] sm:$0xff]  ;;  %v327_v59 = vld [vmem:[#allocation2 + $0x318] sm:$0xff] }
  0x65   :  { %659 = vmatmul.mubr.f32.gmra.mrb[6].mxu1 %v240_v60  ;;  %999 = vmatmul.mubr.f32.gmra.mrb[16].mxu0 %v262_v62  ;;  %v304_v60 = vld [vmem:[#allocation2 + $0x260] sm:$0xff]  ;;  %v326_v62 = vld [vmem:[#allocation2 + $0x310] sm:$0xff] }
  0x66   :  { %663 = vmatprep.mubr.f32.mxu1 %v245_v61  ;;  %1274 = vmatprep.mubr.msk.f32.mxu0 %vm428_vm0, %v267_v63  ;;  %v309_v61 = vld [vmem:[#allocation2 + $0x288] sm:$0xff]  ;;  %v331_v63 = vld [vmem:[#allocation2 + $0x338] sm:$0xff] }
  0x69   :  { %664 = vmatmul.mubr.f32.gmra.mrb[8].mxu1 %v244_v1  ;;  %1004 = vmatmul.mubr.f32.gmra.mrb[18].mxu0 %v266_v3  ;;  %v308_v1 = vld [vmem:[#allocation2 + $0x280] sm:$0xff]  ;;  %v330_v3 = vld [vmem:[#allocation2 + $0x330] sm:$0xff] }
  0x6a   :  { %668 = vmatprep.mubr.f32.mxu1 %v249_v2  ;;  %1275 = vmatprep.mubr.msk.f32.mxu0 %vm428_vm0, %v271_v4  ;;  %v313_v2 = vld [vmem:[#allocation2 + $0x2a8] sm:$0xff]  ;;  %v335_v4 = vld [vmem:[#allocation2 + $0x358] sm:$0xff] }
  0x6d   :  { %669 = vmatmul.mubr.f32.gmra.mrb[10].mxu1 %v248_v5  ;;  %1009 = vmatmul.mubr.f32.gmra.mrb[20].mxu0 %v270_v7  ;;  %v312_v5 = vld [vmem:[#allocation2 + $0x2a0] sm:$0xff]  ;;  %v334_v7 = vld [vmem:[#allocation2 + $0x350] sm:$0xff] }
  0x6e   :  { %673 = vmatprep.mubr.f32.mxu1 %v253_v6  ;;  %1276 = vmatprep.mubr.msk.f32.mxu0 %vm428_vm0, %v275_v8  ;;  %v317_v6 = vld [vmem:[#allocation2 + $0x2c8] sm:$0xff]  ;;  %v339_v8 = vld [vmem:[#allocation2 + $0x378] sm:$0xff] }
  0x71   :  { %674 = vmatmul.mubr.f32.gmra.mrb[12].mxu1 %v252_v9  ;;  %1014 = vmatmul.mubr.f32.gmra.mrb[22].mxu0 %v274_v11  ;;  %v316_v9 = vld [vmem:[#allocation2 + $0x2c0] sm:$0xff]  ;;  %v338_v11 = vld [vmem:[#allocation2 + $0x370] sm:$0xff] }
  0x72   :  { %678 = vmatprep.mubr.f32.mxu1 %v257_v10  ;;  %1277 = vmatprep.mubr.msk.f32.mxu0 %vm428_vm0, %v279_v12  ;;  %v321_v10 = vld [vmem:[#allocation2 + $0x2e8] sm:$0xff]  ;;  %v343_v12 = vld [vmem:[#allocation2 + $0x398] sm:$0xff] }
  0x75   :  { %679 = vmatmul.mubr.f32.gmra.mrb[14].mxu1 %v256_v13  ;;  %1019 = vmatmul.mubr.f32.gmra.mrb[24].mxu0 %v278_v15  ;;  %v320_v13 = vld [vmem:[#allocation2 + $0x2e0] sm:$0xff]  ;;  %v342_v15 = vld [vmem:[#allocation2 + $0x390] sm:$0xff] }
  0x76   :  { %683 = vmatprep.mubr.f32.mxu1 %v261_v14  ;;  %1278 = vmatprep.mubr.msk.f32.mxu0 %vm428_vm0, %v283_v16  ;;  %v325_v14 = vld [vmem:[#allocation2 + $0x308] sm:$0xff]  ;;  %v347_v16 = vld [vmem:[#allocation2 + $0x3b8] sm:$0xff] }
  0x79   :  { %684 = vmatmul.mubr.f32.gmra.mrb[16].mxu1 %v260_v17  ;;  %1024 = vmatmul.mubr.f32.gmra.mrb[26].mxu0 %v282_v19  ;;  %v324_v17 = vld [vmem:[#allocation2 + $0x300] sm:$0xff]  ;;  %v346_v19 = vld [vmem:[#allocation2 + $0x3b0] sm:$0xff] }
  0x7a   :  { %688 = vmatprep.mubr.f32.mxu1 %v265_v18  ;;  %1279 = vmatprep.mubr.msk.f32.mxu0 %vm428_vm0, %v287_v20  ;;  %v329_v18 = vld [vmem:[#allocation2 + $0x328] sm:$0xff]  ;;  %v351_v20 = vld [vmem:[#allocation2 + $0x3d8] sm:$0xff] }
  0x7d   :  { %689 = vmatmul.mubr.f32.gmra.mrb[18].mxu1 %v264_v21  ;;  %1029 = vmatmul.mubr.f32.gmra.mrb[28].mxu0 %v286_v23  ;;  %v328_v21 = vld [vmem:[#allocation2 + $0x320] sm:$0xff]  ;;  %v350_v23 = vld [vmem:[#allocation2 + $0x3d0] sm:$0xff] }
  0x7e   :  { %693 = vmatprep.mubr.f32.mxu1 %v269_v22  ;;  %1280 = vmatprep.mubr.msk.f32.mxu0 %vm428_vm0, %v291_v24  ;;  %v333_v22 = vld [vmem:[#allocation2 + $0x348] sm:$0xff]  ;;  %v355_v24 = vld [vmem:[#allocation2 + $0x3f8] sm:$0xff] }
  0x81   :  { %694 = vmatmul.mubr.f32.gmra.mrb[20].mxu1 %v268_v25  ;;  %1034 = vmatmul.mubr.f32.gmra.mrb[30].mxu0 %v290_v27  ;;  %v332_v25 = vld [vmem:[#allocation2 + $0x340] sm:$0xff]  ;;  %v354_v27 = vld [vmem:[#allocation2 + $0x3f0] sm:$0xff] }
  0x82   :  { %698 = vmatprep.mubr.f32.mxu1 %v273_v26  ;;  %1281 = vmatprep.mubr.msk.f32.mxu0 %vm428_vm0, %v295_v28  ;;  %v337_v26 = vld [vmem:[#allocation2 + $0x368] sm:$0xff]  ;;  %v359_v28 = vld [vmem:[#allocation2 + $0x418] sm:$0xff] }
  0x85   :  { %699 = vmatmul.mubr.f32.gmra.mrb[22].mxu1 %v272_v29  ;;  %1039 = vmatmul.mubr.f32.gmra.mrb[32].mxu0 %v294_v31  ;;  %v336_v29 = vld [vmem:[#allocation2 + $0x360] sm:$0xff]  ;;  %v358_v31 = vld [vmem:[#allocation2 + $0x410] sm:$0xff] }
  0x86   :  { %703 = vmatprep.mubr.f32.mxu1 %v277_v30  ;;  %1282 = vmatprep.mubr.msk.f32.mxu0 %vm428_vm0, %v299_v32  ;;  %v341_v30 = vld [vmem:[#allocation2 + $0x388] sm:$0xff]  ;;  %v363_v32 = vld [vmem:[#allocation2 + $0x438] sm:$0xff] }
  0x89   :  { %704 = vmatmul.mubr.f32.gmra.mrb[24].mxu1 %v276_v33  ;;  %1044 = vmatmul.mubr.f32.gmra.mrb[34].mxu0 %v298_v35  ;;  %v340_v33 = vld [vmem:[#allocation2 + $0x380] sm:$0xff]  ;;  %v362_v35 = vld [vmem:[#allocation2 + $0x430] sm:$0xff] }
  0x8a   :  { %708 = vmatprep.mubr.f32.mxu1 %v281_v34  ;;  %1283 = vmatprep.mubr.msk.f32.mxu0 %vm428_vm0, %v303_v36  ;;  %v345_v34 = vld [vmem:[#allocation2 + $0x3a8] sm:$0xff]  ;;  %v367_v36 = vld [vmem:[#allocation2 + $0x458] sm:$0xff] }
  0x8d   :  { %709 = vmatmul.mubr.f32.gmra.mrb[26].mxu1 %v280_v37  ;;  %1049 = vmatmul.mubr.f32.gmra.mrb[36].mxu0 %v302_v39  ;;  %v344_v37 = vld [vmem:[#allocation2 + $0x3a0] sm:$0xff]  ;;  %v366_v39 = vld [vmem:[#allocation2 + $0x450] sm:$0xff] }
  0x8e   :  { %713 = vmatprep.mubr.f32.mxu1 %v285_v38  ;;  %1284 = vmatprep.mubr.msk.f32.mxu0 %vm428_vm0, %v307_v40  ;;  %v349_v38 = vld [vmem:[#allocation2 + $0x3c8] sm:$0xff]  ;;  %v371_v40 = vld [vmem:[#allocation2 + $0x478] sm:$0xff] }
  0x91   :  { %714 = vmatmul.mubr.f32.gmra.mrb[28].mxu1 %v284_v41  ;;  %1054 = vmatmul.mubr.f32.gmra.mrb[38].mxu0 %v306_v43  ;;  %v348_v41 = vld [vmem:[#allocation2 + $0x3c0] sm:$0xff]  ;;  %v370_v43 = vld [vmem:[#allocation2 + $0x470] sm:$0xff] }
  0x92   :  { %718 = vmatprep.mubr.f32.mxu1 %v289_v42  ;;  %1285 = vmatprep.mubr.msk.f32.mxu0 %vm428_vm0, %v311_v44  ;;  %v353_v42 = vld [vmem:[#allocation2 + $0x3e8] sm:$0xff]  ;;  %v375_v44 = vld [vmem:[#allocation2 + $0x498] sm:$0xff] }
  0x95   :  { %719 = vmatmul.mubr.f32.gmra.mrb[30].mxu1 %v288_v45  ;;  %1059 = vmatmul.mubr.f32.gmra.mrb[40].mxu0 %v310_v47  ;;  %v352_v45 = vld [vmem:[#allocation2 + $0x3e0] sm:$0xff]  ;;  %v374_v47 = vld [vmem:[#allocation2 + $0x490] sm:$0xff] }
  0x96   :  { %723 = vmatprep.mubr.f32.mxu1 %v293_v46  ;;  %1286 = vmatprep.mubr.msk.f32.mxu0 %vm428_vm0, %v315_v48  ;;  %v357_v46 = vld [vmem:[#allocation2 + $0x408] sm:$0xff]  ;;  %v379_v48 = vld [vmem:[#allocation2 + $0x4b8] sm:$0xff] }
  0x99   :  { %724 = vmatmul.mubr.f32.gmra.mrb[32].mxu1 %v292_v49  ;;  %1064 = vmatmul.mubr.f32.gmra.mrb[42].mxu0 %v314_v51  ;;  %v356_v49 = vld [vmem:[#allocation2 + $0x400] sm:$0xff]  ;;  %v378_v51 = vld [vmem:[#allocation2 + $0x4b0] sm:$0xff] }
  0x9a   :  { %728 = vmatprep.mubr.f32.mxu1 %v297_v50  ;;  %1287 = vmatprep.mubr.msk.f32.mxu0 %vm428_vm0, %v319_v52  ;;  %v361_v50 = vld [vmem:[#allocation2 + $0x428] sm:$0xff]  ;;  %v383_v52 = vld [vmem:[#allocation2 + $0x4d8] sm:$0xff] }
  0x9d   :  { %729 = vmatmul.mubr.f32.gmra.mrb[34].mxu1 %v296_v53  ;;  %1069 = vmatmul.mubr.f32.gmra.mrb[44].mxu0 %v318_v0  ;;  %v360_v53 = vld [vmem:[#allocation2 + $0x420] sm:$0xff]  ;;  %v382_v0 = vld [vmem:[#allocation2 + $0x4d0] sm:$0xff] }
  0x9e   :  { %733 = vmatprep.mubr.f32.mxu1 %v301_v54  ;;  %1288 = vmatprep.mubr.msk.f32.mxu0 %vm428_vm0, %v323_v55  ;;  %v365_v54 = vld [vmem:[#allocation2 + $0x448] sm:$0xff]  ;;  %v387_v55 = vld [vmem:[#allocation2 + $0x4f8] sm:$0xff] }
  0xa1   :  { %734 = vmatmul.mubr.f32.gmra.mrb[36].mxu1 %v300_v56  ;;  %1074 = vmatmul.mubr.f32.gmra.mrb[46].mxu0 %v322_v58  ;;  %v364_v56 = vld [vmem:[#allocation2 + $0x440] sm:$0xff]  ;;  %v386_v58 = vld [vmem:[#allocation2 + $0x4f0] sm:$0xff] }
  0xa2   :  { %738 = vmatprep.mubr.f32.mxu1 %v305_v57  ;;  %1289 = vmatprep.mubr.msk.f32.mxu0 %vm428_vm0, %v327_v59  ;;  %v369_v57 = vld [vmem:[#allocation2 + $0x468] sm:$0xff]  ;;  %v391_v59 = vld [vmem:[#allocation2 + $0x518] sm:$0xff] }
  0xa5   :  { %739 = vmatmul.mubr.f32.gmra.mrb[38].mxu1 %v304_v60  ;;  %1079 = vmatmul.mubr.f32.gmra.mrb[48].mxu0 %v326_v62  ;;  %v368_v60 = vld [vmem:[#allocation2 + $0x460] sm:$0xff]  ;;  %v390_v62 = vld [vmem:[#allocation2 + $0x510] sm:$0xff] }
  0xa6   :  { %743 = vmatprep.mubr.f32.mxu1 %v309_v61  ;;  %1290 = vmatprep.mubr.msk.f32.mxu0 %vm428_vm0, %v331_v63  ;;  %v373_v61 = vld [vmem:[#allocation2 + $0x488] sm:$0xff]  ;;  %v395_v63 = vld [vmem:[#allocation2 + $0x538] sm:$0xff] }
  0xa9   :  { %744 = vmatmul.mubr.f32.gmra.mrb[40].mxu1 %v308_v1  ;;  %1084 = vmatmul.mubr.f32.gmra.mrb[50].mxu0 %v330_v3  ;;  %v372_v1 = vld [vmem:[#allocation2 + $0x480] sm:$0xff]  ;;  %v394_v3 = vld [vmem:[#allocation2 + $0x530] sm:$0xff] }
  0xaa   :  { %748 = vmatprep.mubr.f32.mxu1 %v313_v2  ;;  %1291 = vmatprep.mubr.msk.f32.mxu0 %vm428_vm0, %v335_v4  ;;  %v377_v2 = vld [vmem:[#allocation2 + $0x4a8] sm:$0xff]  ;;  %v399_v4 = vld [vmem:[#allocation2 + $0x558] sm:$0xff] }
  0xad   :  { %749 = vmatmul.mubr.f32.gmra.mrb[42].mxu1 %v312_v5  ;;  %1089 = vmatmul.mubr.f32.gmra.mrb[52].mxu0 %v334_v7  ;;  %v376_v5 = vld [vmem:[#allocation2 + $0x4a0] sm:$0xff]  ;;  %v398_v7 = vld [vmem:[#allocation2 + $0x550] sm:$0xff] }
  0xae   :  { %753 = vmatprep.mubr.f32.mxu1 %v317_v6  ;;  %1292 = vmatprep.mubr.msk.f32.mxu0 %vm428_vm0, %v339_v8  ;;  %v381_v6 = vld [vmem:[#allocation2 + $0x4c8] sm:$0xff]  ;;  %v403_v8 = vld [vmem:[#allocation2 + $0x578] sm:$0xff] }
  0xb1   :  { %754 = vmatmul.mubr.f32.gmra.mrb[44].mxu1 %v316_v9  ;;  %1094 = vmatmul.mubr.f32.gmra.mrb[54].mxu0 %v338_v11  ;;  %v380_v9 = vld [vmem:[#allocation2 + $0x4c0] sm:$0xff]  ;;  %v402_v11 = vld [vmem:[#allocation2 + $0x570] sm:$0xff] }
  0xb2   :  { %758 = vmatprep.mubr.f32.mxu1 %v321_v10  ;;  %1293 = vmatprep.mubr.msk.f32.mxu0 %vm428_vm0, %v343_v12  ;;  %v385_v10 = vld [vmem:[#allocation2 + $0x4e8] sm:$0xff]  ;;  %v407_v12 = vld [vmem:[#allocation2 + $0x598] sm:$0xff] }
  0xb5   :  { %759 = vmatmul.mubr.f32.gmra.mrb[46].mxu1 %v320_v13  ;;  %1099 = vmatmul.mubr.f32.gmra.mrb[56].mxu0 %v342_v15  ;;  %v384_v13 = vld [vmem:[#allocation2 + $0x4e0] sm:$0xff]  ;;  %v406_v15 = vld [vmem:[#allocation2 + $0x590] sm:$0xff] }
  0xb6   :  { %763 = vmatprep.mubr.f32.mxu1 %v325_v14  ;;  %1294 = vmatprep.mubr.msk.f32.mxu0 %vm428_vm0, %v347_v16  ;;  %v389_v14 = vld [vmem:[#allocation2 + $0x508] sm:$0xff]  ;;  %v411_v16 = vld [vmem:[#allocation2 + $0x5b8] sm:$0xff] }
  0xb9   :  { %764 = vmatmul.mubr.f32.gmra.mrb[48].mxu1 %v324_v17  ;;  %1104 = vmatmul.mubr.f32.gmra.mrb[58].mxu0 %v346_v19  ;;  %v388_v17 = vld [vmem:[#allocation2 + $0x500] sm:$0xff]  ;;  %v410_v19 = vld [vmem:[#allocation2 + $0x5b0] sm:$0xff] }
  0xba   :  { %768 = vmatprep.mubr.f32.mxu1 %v329_v18  ;;  %1295 = vmatprep.mubr.msk.f32.mxu0 %vm428_vm0, %v351_v20  ;;  %v393_v18 = vld [vmem:[#allocation2 + $0x528] sm:$0xff]  ;;  %v415_v20 = vld [vmem:[#allocation2 + $0x5d8] sm:$0xff] }
  0xbd   :  { %769 = vmatmul.mubr.f32.gmra.mrb[50].mxu1 %v328_v21  ;;  %1109 = vmatmul.mubr.f32.gmra.mrb[60].mxu0 %v350_v23  ;;  %v392_v21 = vld [vmem:[#allocation2 + $0x520] sm:$0xff]  ;;  %v414_v23 = vld [vmem:[#allocation2 + $0x5d0] sm:$0xff] }
  0xbe   :  { %773 = vmatprep.mubr.f32.mxu1 %v333_v22  ;;  %1296 = vmatprep.mubr.msk.f32.mxu0 %vm428_vm0, %v355_v24  ;;  %v397_v22 = vld [vmem:[#allocation2 + $0x548] sm:$0xff]  ;;  %v419_v24 = vld [vmem:[#allocation2 + $0x5f8] sm:$0xff] }
  0xc1   :  { %774 = vmatmul.mubr.f32.gmra.mrb[52].mxu1 %v332_v25  ;;  %1114 = vmatmul.mubr.f32.gmra.mrb[62].mxu0 %v354_v27  ;;  %v396_v25 = vld [vmem:[#allocation2 + $0x540] sm:$0xff]  ;;  %v418_v27 = vld [vmem:[#allocation2 + $0x5f0] sm:$0xff] }
  0xc2   :  { %778 = vmatprep.mubr.f32.mxu1 %v337_v26  ;;  %1297 = vmatprep.mubr.msk.f32.mxu0 %vm428_vm0, %v359_v28  ;;  %v401_v26 = vld [vmem:[#allocation2 + $0x568] sm:$0xff]  ;;  %v423_v28 = vld [vmem:[#allocation2 + $0x618] sm:$0xff] }
  0xc5   :  { %779 = vmatmul.mubr.f32.gmra.mrb[54].mxu1 %v336_v29  ;;  %1119 = vmatmul.mubr.f32.gmra.mrb[64].mxu0 %v358_v31  ;;  %v400_v29 = vld [vmem:[#allocation2 + $0x560] sm:$0xff]  ;;  %v422_v31 = vld [vmem:[#allocation2 + $0x610] sm:$0xff] }
  0xc6   :  { %783 = vmatprep.mubr.f32.mxu1 %v341_v30  ;;  %1298 = vmatprep.mubr.msk.f32.mxu0 %vm428_vm0, %v363_v32  ;;  %v405_v30 = vld [vmem:[#allocation2 + $0x588] sm:$0xff]  ;;  %v427_v32 = vld [vmem:[#allocation2 + $0x638] sm:$0xff] }
  0xc9   :  { %784 = vmatmul.mubr.f32.gmra.mrb[56].mxu1 %v340_v33  ;;  %1124 = vmatmul.mubr.f32.gmra.mrb[66].mxu0 %v362_v35  ;;  %v404_v33 = vld [vmem:[#allocation2 + $0x580] sm:$0xff]  ;;  %v426_v35 = vld [vmem:[#allocation2 + $0x630] sm:$0xff] }
  0xca   :  { %788 = vmatprep.mubr.f32.mxu1 %v345_v34  ;;  %1299 = vmatprep.mubr.msk.f32.mxu0 %vm428_vm0, %v367_v36  ;;  %v409_v34 = vld [vmem:[#allocation2 + $0x5a8] sm:$0xff]  ;;  %v408_v36 = vld [vmem:[#allocation2 + $0x5a0] sm:$0xff] }
  0xcd   :  { %789 = vmatmul.mubr.f32.gmra.mrb[58].mxu1 %v344_v37  ;;  %1129 = vmatmul.mubr.f32.gmra.mrb[68].mxu0 %v366_v39  ;;  %v413_v37 = vld [vmem:[#allocation2 + $0x5c8] sm:$0xff] }
  0xce   :  { %793 = vmatprep.mubr.f32.mxu1 %v349_v38  ;;  %1300 = vmatprep.mubr.msk.f32.mxu0 %vm428_vm0, %v371_v40  ;;  %v412_v38 = vld [vmem:[#allocation2 + $0x5c0] sm:$0xff]  ;;  %v417_v39 = vld [vmem:[#allocation2 + $0x5e8] sm:$0xff] }
  0xcf   :  { %v416_v40 = vld [vmem:[#allocation2 + $0x5e0] sm:$0xff] }
  0xd1   :  { %794 = vmatmul.mubr.f32.gmra.mrb[60].mxu1 %v348_v41  ;;  %1134 = vmatmul.mubr.f32.gmra.mrb[70].mxu0 %v370_v43  ;;  %v421_v41 = vld [vmem:[#allocation2 + $0x608] sm:$0xff] }
  0xd2   :  { %798 = vmatprep.mubr.f32.mxu1 %v353_v42  ;;  %1301 = vmatprep.mubr.msk.f32.mxu0 %vm428_vm0, %v375_v44  ;;  %v420_v42 = vld [vmem:[#allocation2 + $0x600] sm:$0xff]  ;;  %v425_v43 = vld [vmem:[#allocation2 + $0x628] sm:$0xff] }
  0xd5   :  { %799 = vmatmul.mubr.f32.gmra.mrb[62].mxu1 %v352_v45  ;;  %1139 = vmatmul.mubr.f32.gmra.mrb[72].mxu0 %v374_v47  ;;  %v424_v45 = vld [vmem:[#allocation2 + $0x620] sm:$0xff] }
  0xd6   :  { %803 = vmatprep.mubr.f32.mxu1 %v357_v46  ;;  %1302 = vmatprep.mubr.msk.f32.mxu0 %vm428_vm0, %v379_v48 }
  0xd9   :  { %804 = vmatmul.mubr.f32.gmra.mrb[64].mxu1 %v356_v49  ;;  %1144 = vmatmul.mubr.f32.gmra.mrb[74].mxu0 %v378_v51 }
  0xda   :  { %808 = vmatprep.mubr.f32.mxu1 %v361_v50  ;;  %1303 = vmatprep.mubr.msk.f32.mxu0 %vm428_vm0, %v383_v52 }
  0xdd   :  { %809 = vmatmul.mubr.f32.gmra.mrb[66].mxu1 %v360_v53  ;;  %1149 = vmatmul.mubr.f32.gmra.mrb[76].mxu0 %v382_v0 }
  0xde   :  { %813 = vmatprep.mubr.f32.mxu1 %v365_v54  ;;  %1304 = vmatprep.mubr.msk.f32.mxu0 %vm428_vm0, %v387_v55 }
  0xe1   :  { %814 = vmatmul.mubr.f32.gmra.mrb[68].mxu1 %v364_v56  ;;  %1154 = vmatmul.mubr.f32.gmra.mrb[78].mxu0 %v386_v58 }
  0xe2   :  { %818 = vmatprep.mubr.f32.mxu1 %v369_v57  ;;  %1305 = vmatprep.mubr.msk.f32.mxu0 %vm428_vm0, %v391_v59 }
  0xe5   :  { %819 = vmatmul.mubr.f32.gmra.mrb[70].mxu1 %v368_v60  ;;  %1159 = vmatmul.mubr.f32.gmra.mrb[80].mxu0 %v390_v62 }
  0xe6   :  { %823 = vmatprep.mubr.f32.mxu1 %v373_v61  ;;  %1306 = vmatprep.mubr.msk.f32.mxu0 %vm428_vm0, %v395_v63 }
  0xe9   :  { %824 = vmatmul.mubr.f32.gmra.mrb[72].mxu1 %v372_v1  ;;  %1164 = vmatmul.mubr.f32.gmra.mrb[82].mxu0 %v394_v3 }
  0xea   :  { %828 = vmatprep.mubr.f32.mxu1 %v377_v2  ;;  %1307 = vmatprep.mubr.msk.f32.mxu0 %vm428_vm0, %v399_v4 }
  0xed   :  { %829 = vmatmul.mubr.f32.gmra.mrb[74].mxu1 %v376_v5  ;;  %1169 = vmatmul.mubr.f32.gmra.mrb[84].mxu0 %v398_v7 }
  0xee   :  { %833 = vmatprep.mubr.f32.mxu1 %v381_v6  ;;  %1308 = vmatprep.mubr.msk.f32.mxu0 %vm428_vm0, %v403_v8 }
  0xf1   :  { %834 = vmatmul.mubr.f32.gmra.mrb[76].mxu1 %v380_v9  ;;  %1174 = vmatmul.mubr.f32.gmra.mrb[86].mxu0 %v402_v11 }
  0xf2   :  { %838 = vmatprep.mubr.f32.mxu1 %v385_v10  ;;  %1309 = vmatprep.mubr.msk.f32.mxu0 %vm428_vm0, %v407_v12 }
  0xf5   :  { %839 = vmatmul.mubr.f32.gmra.mrb[78].mxu1 %v384_v13  ;;  %1179 = vmatmul.mubr.f32.gmra.mrb[88].mxu0 %v406_v15 }
  0xf6   :  { %843 = vmatprep.mubr.f32.mxu1 %v389_v14  ;;  %1310 = vmatprep.mubr.msk.f32.mxu0 %vm428_vm0, %v411_v16 }
  0xf9   :  { %844 = vmatmul.mubr.f32.gmra.mrb[80].mxu1 %v388_v17  ;;  %1184 = vmatmul.mubr.f32.gmra.mrb[90].mxu0 %v410_v19 }
  0xfa   :  { %848 = vmatprep.mubr.f32.mxu1 %v393_v18  ;;  %1311 = vmatprep.mubr.msk.f32.mxu0 %vm428_vm0, %v415_v20 }
  0xfd   :  { %849 = vmatmul.mubr.f32.gmra.mrb[82].mxu1 %v392_v21  ;;  %1189 = vmatmul.mubr.f32.gmra.mrb[92].mxu0 %v414_v23 }
  0xfe   :  { %853 = vmatprep.mubr.f32.mxu1 %v397_v22  ;;  %1312 = vmatprep.mubr.msk.f32.mxu0 %vm428_vm0, %v419_v24 }
 0x101   :  { %854 = vmatmul.mubr.f32.gmra.mrb[84].mxu1 %v396_v25  ;;  %1194 = vmatmul.mubr.f32.gmra.mrb[94].mxu0 %v418_v27 }
 0x102   :  { %858 = vmatprep.mubr.f32.mxu1 %v401_v26  ;;  %1313 = vmatprep.mubr.msk.f32.mxu0 %vm428_vm0, %v423_v28 }
 0x105   :  { %859 = vmatmul.mubr.f32.gmra.mrb[86].mxu1 %v400_v29  ;;  %1199 = vmatmul.mubr.f32.gmra.mrb[96].mxu0 %v422_v31 }
 0x106   :  { %863 = vmatprep.mubr.f32.mxu1 %v405_v30  ;;  %1314 = vmatprep.mubr.msk.f32.mxu0 %vm428_vm0, %v427_v32 }
 0x109   :  { %864 = vmatmul.mubr.f32.gmra.mrb[88].mxu1 %v404_v33  ;;  %1204 = vmatmul.mubr.f32.gmra.mrb[98].mxu0 %v426_v35 }
 0x10a   :  { %868 = vmatprep.mubr.f32.mxu1 %v409_v34 }
 0x10d   :  { %869 = vmatmul.mubr.f32.gmra.mrb[90].mxu1 %v408_v36 }
 0x10e   :  { %873 = vmatprep.mubr.f32.mxu1 %v413_v37 }
 0x111   :  { %874 = vmatmul.mubr.f32.gmra.mrb[92].mxu1 %v412_v38 }
 0x112   :  { %878 = vmatprep.mubr.f32.mxu1 %v417_v39 }
 0x115   :  { %879 = vmatmul.mubr.f32.gmra.mrb[94].mxu1 %v416_v40 }
 0x116   :  { %883 = vmatprep.mubr.f32.mxu1 %v421_v41 }
 0x118   :  { %v960_v44 = vpop.f32.mrb[0].mxu0 }
 0x119   :  { %884 = vmatmul.mubr.f32.gmra.mrb[96].mxu1 %v420_v42  ;;  %v962_v46 = vpop.f32.mrb[1].mxu0 }
 0x11a   :  { %888 = vmatprep.mubr.f32.mxu1 %v425_v43 }
 0x11c   :  { %v965_v47 = vpop.f32.mrb[2].mxu0 }
 0x11d   :  { %889 = vmatmul.mubr.f32.gmra.mrb[98].mxu1 %v424_v45  ;;  %v967_v48 = vpop.f32.mrb[3].mxu0 }
 0x120   :  { %v970_v49 = vpop.f32.mrb[4].mxu0 }
 0x121   :  { %v972_v50 = vpop.f32.mrb[5].mxu0 }
 0x124   :  { %v975_v51 = vpop.f32.mrb[6].mxu0 }
 0x125   :  { %v977_v52 = vpop.f32.mrb[7].mxu0 }
 0x128   :  { %v980_v53 = vpop.f32.mrb[8].mxu0 }
 0x129   :  { %v982_v54 = vpop.f32.mrb[9].mxu0 }
 0x12c   :  { %v645_v0 = vpop.f32.mrb[0].mxu1  ;;  %v985_v57 = vpop.f32.mrb[10].mxu0 }
 0x12d   :  { %v961_v55 = vadd.f32 %v960_v44, %v645_v0  ;;  %v647_v56 = vpop.f32.mrb[1].mxu1  ;;  %v987_v58 = vpop.f32.mrb[11].mxu0 }
 0x12f   :  { %1210 = vst.msk [vmem:[%s2085_s3] sm:$0xff] %vm1209_vm1, %v961_v55 }
 0x130   :  { %v650_v59 = vpop.f32.mrb[2].mxu1  ;;  %v990_v62 = vpop.f32.mrb[12].mxu0 }
 0x131   :  { %v966_v60 = vadd.f32 %v965_v47, %v650_v59  ;;  %v652_v61 = vpop.f32.mrb[3].mxu1  ;;  %v992_v63 = vpop.f32.mrb[13].mxu0 }
 0x133   :  { %1211 = vst.msk [vmem:[%s2085_s3 + $0x8] sm:$0xff] %vm1209_vm1, %v966_v60 }
 0x134   :  { %v655_v1 = vpop.f32.mrb[4].mxu1  ;;  %v995_v4 = vpop.f32.mrb[14].mxu0 }
 0x135   :  { %v971_v2 = vadd.f32 %v970_v49, %v655_v1  ;;  %v657_v3 = vpop.f32.mrb[5].mxu1  ;;  %v997_v5 = vpop.f32.mrb[15].mxu0 }
 0x137   :  { %1212 = vst.msk [vmem:[%s2085_s3 + $0x10] sm:$0xff] %vm1209_vm1, %v971_v2 }
 0x138   :  { %v660_v6 = vpop.f32.mrb[6].mxu1  ;;  %v1000_v9 = vpop.f32.mrb[16].mxu0 }
 0x139   :  { %v976_v7 = vadd.f32 %v975_v51, %v660_v6  ;;  %v662_v8 = vpop.f32.mrb[7].mxu1  ;;  %v1002_v10 = vpop.f32.mrb[17].mxu0 }
 0x13b   :  { %1213 = vst.msk [vmem:[%s2085_s3 + $0x18] sm:$0xff] %vm1209_vm1, %v976_v7 }
 0x13c   :  { %v665_v11 = vpop.f32.mrb[8].mxu1  ;;  %v1005_v14 = vpop.f32.mrb[18].mxu0 }
 0x13d   :  { %v981_v12 = vadd.f32 %v980_v53, %v665_v11  ;;  %v667_v13 = vpop.f32.mrb[9].mxu1  ;;  %v1007_v15 = vpop.f32.mrb[19].mxu0 }
 0x13f   :  { %1214 = vst.msk [vmem:[%s2085_s3 + $0x20] sm:$0xff] %vm1209_vm1, %v981_v12 }
 0x140   :  { %v670_v16 = vpop.f32.mrb[10].mxu1  ;;  %v1010_v19 = vpop.f32.mrb[20].mxu0 }
 0x141   :  { %v986_v17 = vadd.f32 %v985_v57, %v670_v16  ;;  %v672_v18 = vpop.f32.mrb[11].mxu1  ;;  %v1012_v20 = vpop.f32.mrb[21].mxu0 }
 0x143   :  { %1215 = vst.msk [vmem:[%s2085_s3 + $0x28] sm:$0xff] %vm1209_vm1, %v986_v17 }
 0x144   :  { %v675_v21 = vpop.f32.mrb[12].mxu1  ;;  %v1015_v24 = vpop.f32.mrb[22].mxu0 }
 0x145   :  { %v991_v22 = vadd.f32 %v990_v62, %v675_v21  ;;  %v677_v23 = vpop.f32.mrb[13].mxu1  ;;  %v1017_v25 = vpop.f32.mrb[23].mxu0 }
 0x147   :  { %1216 = vst.msk [vmem:[%s2085_s3 + $0x30] sm:$0xff] %vm1209_vm1, %v991_v22 }
 0x148   :  { %v680_v26 = vpop.f32.mrb[14].mxu1  ;;  %v1020_v29 = vpop.f32.mrb[24].mxu0 }
 0x149   :  { %v996_v27 = vadd.f32 %v995_v4, %v680_v26  ;;  %v682_v28 = vpop.f32.mrb[15].mxu1  ;;  %v1022_v30 = vpop.f32.mrb[25].mxu0 }
 0x14b   :  { %1217 = vst.msk [vmem:[%s2085_s3 + $0x38] sm:$0xff] %vm1209_vm1, %v996_v27 }
 0x14c   :  { %v685_v31 = vpop.f32.mrb[16].mxu1  ;;  %v1025_v34 = vpop.f32.mrb[26].mxu0 }
 0x14d   :  { %v1001_v32 = vadd.f32 %v1000_v9, %v685_v31  ;;  %v687_v33 = vpop.f32.mrb[17].mxu1  ;;  %v1027_v35 = vpop.f32.mrb[27].mxu0 }
 0x14f   :  { %1218 = vst.msk [vmem:[%s2085_s3 + $0x40] sm:$0xff] %vm1209_vm1, %v1001_v32 }
 0x150   :  { %v690_v36 = vpop.f32.mrb[18].mxu1  ;;  %v1030_v39 = vpop.f32.mrb[28].mxu0 }
 0x151   :  { %v1006_v37 = vadd.f32 %v1005_v14, %v690_v36  ;;  %v692_v38 = vpop.f32.mrb[19].mxu1  ;;  %v1032_v40 = vpop.f32.mrb[29].mxu0 }
 0x153   :  { %1219 = vst.msk [vmem:[%s2085_s3 + $0x48] sm:$0xff] %vm1209_vm1, %v1006_v37 }
 0x154   :  { %v695_v41 = vpop.f32.mrb[20].mxu1  ;;  %v1035_v44 = vpop.f32.mrb[30].mxu0 }
 0x155   :  { %v1011_v42 = vadd.f32 %v1010_v19, %v695_v41  ;;  %v697_v43 = vpop.f32.mrb[21].mxu1  ;;  %v1037_v45 = vpop.f32.mrb[31].mxu0 }
 0x157   :  { %1220 = vst.msk [vmem:[%s2085_s3 + $0x50] sm:$0xff] %vm1209_vm1, %v1011_v42 }
 0x158   :  { %v700_v46 = vpop.f32.mrb[22].mxu1  ;;  %v1040_v49 = vpop.f32.mrb[32].mxu0 }
 0x159   :  { %v1016_v47 = vadd.f32 %v1015_v24, %v700_v46  ;;  %v702_v48 = vpop.f32.mrb[23].mxu1  ;;  %v1042_v50 = vpop.f32.mrb[33].mxu0 }
 0x15b   :  { %1221 = vst.msk [vmem:[%s2085_s3 + $0x58] sm:$0xff] %vm1209_vm1, %v1016_v47 }
 0x15c   :  { %v705_v51 = vpop.f32.mrb[24].mxu1  ;;  %v1045_v54 = vpop.f32.mrb[34].mxu0 }
 0x15d   :  { %v1021_v52 = vadd.f32 %v1020_v29, %v705_v51  ;;  %v707_v53 = vpop.f32.mrb[25].mxu1  ;;  %v1047_v0 = vpop.f32.mrb[35].mxu0 }
 0x15f   :  { %1222 = vst.msk [vmem:[%s2085_s3 + $0x60] sm:$0xff] %vm1209_vm1, %v1021_v52 }
 0x160   :  { %v710_v55 = vpop.f32.mrb[26].mxu1  ;;  %v1050_v58 = vpop.f32.mrb[36].mxu0 }
 0x161   :  { %v1026_v56 = vadd.f32 %v1025_v34, %v710_v55  ;;  %v712_v57 = vpop.f32.mrb[27].mxu1  ;;  %v1052_v59 = vpop.f32.mrb[37].mxu0 }
 0x163   :  { %1223 = vst.msk [vmem:[%s2085_s3 + $0x68] sm:$0xff] %vm1209_vm1, %v1026_v56 }
 0x164   :  { %v715_v60 = vpop.f32.mrb[28].mxu1  ;;  %v1055_v63 = vpop.f32.mrb[38].mxu0 }
 0x165   :  { %v1031_v61 = vadd.f32 %v1030_v39, %v715_v60  ;;  %v717_v62 = vpop.f32.mrb[29].mxu1  ;;  %v1057_v1 = vpop.f32.mrb[39].mxu0 }
 0x167   :  { %1224 = vst.msk [vmem:[%s2085_s3 + $0x70] sm:$0xff] %vm1209_vm1, %v1031_v61 }
 0x168   :  { %v720_v2 = vpop.f32.mrb[30].mxu1  ;;  %v1060_v5 = vpop.f32.mrb[40].mxu0 }
 0x169   :  { %v1036_v3 = vadd.f32 %v1035_v44, %v720_v2  ;;  %v722_v4 = vpop.f32.mrb[31].mxu1  ;;  %v1062_v6 = vpop.f32.mrb[41].mxu0 }
 0x16b   :  { %1225 = vst.msk [vmem:[%s2085_s3 + $0x78] sm:$0xff] %vm1209_vm1, %v1036_v3 }
 0x16c   :  { %v725_v7 = vpop.f32.mrb[32].mxu1  ;;  %v1065_v10 = vpop.f32.mrb[42].mxu0 }
 0x16d   :  { %v1041_v8 = vadd.f32 %v1040_v49, %v725_v7  ;;  %v727_v9 = vpop.f32.mrb[33].mxu1  ;;  %v1067_v11 = vpop.f32.mrb[43].mxu0 }
 0x16f   :  { %1226 = vst.msk [vmem:[%s2085_s3 + $0x80] sm:$0xff] %vm1209_vm1, %v1041_v8 }
 0x170   :  { %v730_v12 = vpop.f32.mrb[34].mxu1  ;;  %v1070_v15 = vpop.f32.mrb[44].mxu0 }
 0x171   :  { %v1046_v13 = vadd.f32 %v1045_v54, %v730_v12  ;;  %v732_v14 = vpop.f32.mrb[35].mxu1  ;;  %v1072_v16 = vpop.f32.mrb[45].mxu0 }
 0x173   :  { %1227 = vst.msk [vmem:[%s2085_s3 + $0x88] sm:$0xff] %vm1209_vm1, %v1046_v13 }
 0x174   :  { %v735_v17 = vpop.f32.mrb[36].mxu1  ;;  %v1075_v20 = vpop.f32.mrb[46].mxu0 }
 0x175   :  { %v1051_v18 = vadd.f32 %v1050_v58, %v735_v17  ;;  %v737_v19 = vpop.f32.mrb[37].mxu1  ;;  %v1077_v21 = vpop.f32.mrb[47].mxu0 }
 0x177   :  { %1228 = vst.msk [vmem:[%s2085_s3 + $0x90] sm:$0xff] %vm1209_vm1, %v1051_v18 }
 0x178   :  { %v740_v22 = vpop.f32.mrb[38].mxu1  ;;  %v1080_v25 = vpop.f32.mrb[48].mxu0 }
 0x179   :  { %v1056_v23 = vadd.f32 %v1055_v63, %v740_v22  ;;  %v742_v24 = vpop.f32.mrb[39].mxu1  ;;  %v1082_v26 = vpop.f32.mrb[49].mxu0 }
 0x17b   :  { %1229 = vst.msk [vmem:[%s2085_s3 + $0x98] sm:$0xff] %vm1209_vm1, %v1056_v23 }
 0x17c   :  { %v745_v27 = vpop.f32.mrb[40].mxu1  ;;  %v1085_v30 = vpop.f32.mrb[50].mxu0 }
 0x17d   :  { %v1061_v28 = vadd.f32 %v1060_v5, %v745_v27  ;;  %v747_v29 = vpop.f32.mrb[41].mxu1  ;;  %v1087_v31 = vpop.f32.mrb[51].mxu0 }
 0x17f   :  { %1230 = vst.msk [vmem:[%s2085_s3 + $0xa0] sm:$0xff] %vm1209_vm1, %v1061_v28 }
 0x180   :  { %v750_v32 = vpop.f32.mrb[42].mxu1  ;;  %v1090_v35 = vpop.f32.mrb[52].mxu0 }
 0x181   :  { %v1066_v33 = vadd.f32 %v1065_v10, %v750_v32  ;;  %v752_v34 = vpop.f32.mrb[43].mxu1  ;;  %v1092_v36 = vpop.f32.mrb[53].mxu0 }
 0x183   :  { %1231 = vst.msk [vmem:[%s2085_s3 + $0xa8] sm:$0xff] %vm1209_vm1, %v1066_v33 }
 0x184   :  { %v755_v37 = vpop.f32.mrb[44].mxu1  ;;  %v1095_v40 = vpop.f32.mrb[54].mxu0 }
 0x185   :  { %v1071_v38 = vadd.f32 %v1070_v15, %v755_v37  ;;  %v757_v39 = vpop.f32.mrb[45].mxu1  ;;  %v1097_v41 = vpop.f32.mrb[55].mxu0 }
 0x187   :  { %1232 = vst.msk [vmem:[%s2085_s3 + $0xb0] sm:$0xff] %vm1209_vm1, %v1071_v38 }
 0x188   :  { %v760_v42 = vpop.f32.mrb[46].mxu1  ;;  %v1100_v45 = vpop.f32.mrb[56].mxu0 }
 0x189   :  { %v1076_v43 = vadd.f32 %v1075_v20, %v760_v42  ;;  %v762_v44 = vpop.f32.mrb[47].mxu1  ;;  %v1102_v46 = vpop.f32.mrb[57].mxu0 }
 0x18b   :  { %1233 = vst.msk [vmem:[%s2085_s3 + $0xb8] sm:$0xff] %vm1209_vm1, %v1076_v43 }
 0x18c   :  { %v765_v47 = vpop.f32.mrb[48].mxu1  ;;  %v1105_v50 = vpop.f32.mrb[58].mxu0 }
 0x18d   :  { %v1081_v48 = vadd.f32 %v1080_v25, %v765_v47  ;;  %v767_v49 = vpop.f32.mrb[49].mxu1  ;;  %v1107_v51 = vpop.f32.mrb[59].mxu0 }
 0x18f   :  { %1234 = vst.msk [vmem:[%s2085_s3 + $0xc0] sm:$0xff] %vm1209_vm1, %v1081_v48 }
 0x190   :  { %v770_v52 = vpop.f32.mrb[50].mxu1  ;;  %v1110_v0 = vpop.f32.mrb[60].mxu0 }
 0x191   :  { %v1086_v53 = vadd.f32 %v1085_v30, %v770_v52  ;;  %v772_v54 = vpop.f32.mrb[51].mxu1  ;;  %v1112_v55 = vpop.f32.mrb[61].mxu0 }
 0x193   :  { %1235 = vst.msk [vmem:[%s2085_s3 + $0xc8] sm:$0xff] %vm1209_vm1, %v1086_v53 }
 0x194   :  { %v775_v56 = vpop.f32.mrb[52].mxu1  ;;  %v1115_v59 = vpop.f32.mrb[62].mxu0 }
 0x195   :  { %v1091_v57 = vadd.f32 %v1090_v35, %v775_v56  ;;  %v777_v58 = vpop.f32.mrb[53].mxu1  ;;  %v1117_v60 = vpop.f32.mrb[63].mxu0 }
 0x197   :  { %1236 = vst.msk [vmem:[%s2085_s3 + $0xd0] sm:$0xff] %vm1209_vm1, %v1091_v57 }
 0x198   :  { %v780_v61 = vpop.f32.mrb[54].mxu1  ;;  %v1120_v1 = vpop.f32.mrb[64].mxu0 }
 0x199   :  { %v1096_v62 = vadd.f32 %v1095_v40, %v780_v61  ;;  %v782_v63 = vpop.f32.mrb[55].mxu1  ;;  %v1122_v2 = vpop.f32.mrb[65].mxu0 }
 0x19b   :  { %1237 = vst.msk [vmem:[%s2085_s3 + $0xd8] sm:$0xff] %vm1209_vm1, %v1096_v62 }
 0x19c   :  { %v785_v3 = vpop.f32.mrb[56].mxu1  ;;  %v1125_v6 = vpop.f32.mrb[66].mxu0 }
 0x19d   :  { %v1101_v4 = vadd.f32 %v1100_v45, %v785_v3  ;;  %v787_v5 = vpop.f32.mrb[57].mxu1  ;;  %v1127_v7 = vpop.f32.mrb[67].mxu0 }
 0x19f   :  { %1238 = vst.msk [vmem:[%s2085_s3 + $0xe0] sm:$0xff] %vm1209_vm1, %v1101_v4 }
 0x1a0   :  { %v790_v8 = vpop.f32.mrb[58].mxu1  ;;  %v1130_v11 = vpop.f32.mrb[68].mxu0 }
 0x1a1   :  { %v1106_v9 = vadd.f32 %v1105_v50, %v790_v8  ;;  %v792_v10 = vpop.f32.mrb[59].mxu1  ;;  %v1132_v12 = vpop.f32.mrb[69].mxu0 }
 0x1a3   :  { %1239 = vst.msk [vmem:[%s2085_s3 + $0xe8] sm:$0xff] %vm1209_vm1, %v1106_v9 }
 0x1a4   :  { %v795_v13 = vpop.f32.mrb[60].mxu1  ;;  %v1135_v16 = vpop.f32.mrb[70].mxu0 }
 0x1a5   :  { %v1111_v14 = vadd.f32 %v1110_v0, %v795_v13  ;;  %v797_v15 = vpop.f32.mrb[61].mxu1  ;;  %v1137_v17 = vpop.f32.mrb[71].mxu0 }
 0x1a7   :  { %1240 = vst.msk [vmem:[%s2085_s3 + $0xf0] sm:$0xff] %vm1209_vm1, %v1111_v14 }
 0x1a8   :  { %v800_v18 = vpop.f32.mrb[62].mxu1  ;;  %v1140_v21 = vpop.f32.mrb[72].mxu0 }
 0x1a9   :  { %v1116_v19 = vadd.f32 %v1115_v59, %v800_v18  ;;  %v802_v20 = vpop.f32.mrb[63].mxu1  ;;  %v1142_v22 = vpop.f32.mrb[73].mxu0 }
 0x1ab   :  { %1241 = vst.msk [vmem:[%s2085_s3 + $0xf8] sm:$0xff] %vm1209_vm1, %v1116_v19 }
 0x1ac   :  { %v805_v23 = vpop.f32.mrb[64].mxu1  ;;  %v1145_v26 = vpop.f32.mrb[74].mxu0 }
 0x1ad   :  { %v1121_v24 = vadd.f32 %v1120_v1, %v805_v23  ;;  %v807_v25 = vpop.f32.mrb[65].mxu1  ;;  %v1147_v27 = vpop.f32.mrb[75].mxu0 }
 0x1af   :  { %1242 = vst.msk [vmem:[%s2085_s3 + $0x100] sm:$0xff] %vm1209_vm1, %v1121_v24 }
 0x1b0   :  { %v810_v28 = vpop.f32.mrb[66].mxu1  ;;  %v1150_v31 = vpop.f32.mrb[76].mxu0 }
 0x1b1   :  { %v1126_v29 = vadd.f32 %v1125_v6, %v810_v28  ;;  %v812_v30 = vpop.f32.mrb[67].mxu1  ;;  %v1152_v32 = vpop.f32.mrb[77].mxu0 }
 0x1b3   :  { %1243 = vst.msk [vmem:[%s2085_s3 + $0x108] sm:$0xff] %vm1209_vm1, %v1126_v29 }
 0x1b4   :  { %v815_v33 = vpop.f32.mrb[68].mxu1  ;;  %v1155_v36 = vpop.f32.mrb[78].mxu0 }
 0x1b5   :  { %v1131_v34 = vadd.f32 %v1130_v11, %v815_v33  ;;  %v817_v35 = vpop.f32.mrb[69].mxu1  ;;  %v1157_v37 = vpop.f32.mrb[79].mxu0 }
 0x1b7   :  { %1244 = vst.msk [vmem:[%s2085_s3 + $0x110] sm:$0xff] %vm1209_vm1, %v1131_v34 }
 0x1b8   :  { %v820_v38 = vpop.f32.mrb[70].mxu1  ;;  %v1160_v41 = vpop.f32.mrb[80].mxu0 }
 0x1b9   :  { %v1136_v39 = vadd.f32 %v1135_v16, %v820_v38  ;;  %v822_v40 = vpop.f32.mrb[71].mxu1  ;;  %v1162_v42 = vpop.f32.mrb[81].mxu0 }
 0x1bb   :  { %1245 = vst.msk [vmem:[%s2085_s3 + $0x118] sm:$0xff] %vm1209_vm1, %v1136_v39 }
 0x1bc   :  { %v825_v43 = vpop.f32.mrb[72].mxu1  ;;  %v1165_v46 = vpop.f32.mrb[82].mxu0 }
 0x1bd   :  { %v1141_v44 = vadd.f32 %v1140_v21, %v825_v43  ;;  %v827_v45 = vpop.f32.mrb[73].mxu1  ;;  %v1167_v47 = vpop.f32.mrb[83].mxu0 }
 0x1bf   :  { %1246 = vst.msk [vmem:[%s2085_s3 + $0x120] sm:$0xff] %vm1209_vm1, %v1141_v44 }
 0x1c0   :  { %v830_v48 = vpop.f32.mrb[74].mxu1  ;;  %v1170_v51 = vpop.f32.mrb[84].mxu0 }
 0x1c1   :  { %v1146_v49 = vadd.f32 %v1145_v26, %v830_v48  ;;  %v832_v50 = vpop.f32.mrb[75].mxu1  ;;  %v1172_v52 = vpop.f32.mrb[85].mxu0 }
 0x1c3   :  { %1247 = vst.msk [vmem:[%s2085_s3 + $0x128] sm:$0xff] %vm1209_vm1, %v1146_v49 }
 0x1c4   :  { %v835_v53 = vpop.f32.mrb[76].mxu1  ;;  %v1175_v55 = vpop.f32.mrb[86].mxu0 }
 0x1c5   :  { %v1151_v54 = vadd.f32 %v1150_v31, %v835_v53  ;;  %v837_v0 = vpop.f32.mrb[77].mxu1  ;;  %v1177_v56 = vpop.f32.mrb[87].mxu0 }
 0x1c7   :  { %1248 = vst.msk [vmem:[%s2085_s3 + $0x130] sm:$0xff] %vm1209_vm1, %v1151_v54 }
 0x1c8   :  { %v840_v57 = vpop.f32.mrb[78].mxu1  ;;  %v1180_v60 = vpop.f32.mrb[88].mxu0 }
 0x1c9   :  { %v1156_v58 = vadd.f32 %v1155_v36, %v840_v57  ;;  %v842_v59 = vpop.f32.mrb[79].mxu1  ;;  %v1182_v61 = vpop.f32.mrb[89].mxu0 }
 0x1cb   :  { %1249 = vst.msk [vmem:[%s2085_s3 + $0x138] sm:$0xff] %vm1209_vm1, %v1156_v58 }
 0x1cc   :  { %v845_v62 = vpop.f32.mrb[80].mxu1  ;;  %v1185_v2 = vpop.f32.mrb[90].mxu0 }
 0x1cd   :  { %v1161_v63 = vadd.f32 %v1160_v41, %v845_v62  ;;  %v847_v1 = vpop.f32.mrb[81].mxu1  ;;  %v1187_v3 = vpop.f32.mrb[91].mxu0 }
 0x1cf   :  { %1250 = vst.msk [vmem:[%s2085_s3 + $0x140] sm:$0xff] %vm1209_vm1, %v1161_v63 }
 0x1d0   :  { %v850_v4 = vpop.f32.mrb[82].mxu1  ;;  %v1190_v7 = vpop.f32.mrb[92].mxu0 }
 0x1d1   :  { %v1166_v5 = vadd.f32 %v1165_v46, %v850_v4  ;;  %v852_v6 = vpop.f32.mrb[83].mxu1  ;;  %v1192_v8 = vpop.f32.mrb[93].mxu0 }
 0x1d3   :  { %1251 = vst.msk [vmem:[%s2085_s3 + $0x148] sm:$0xff] %vm1209_vm1, %v1166_v5 }
 0x1d4   :  { %v855_v9 = vpop.f32.mrb[84].mxu1  ;;  %v1195_v12 = vpop.f32.mrb[94].mxu0 }
 0x1d5   :  { %v1171_v10 = vadd.f32 %v1170_v51, %v855_v9  ;;  %v857_v11 = vpop.f32.mrb[85].mxu1  ;;  %v1197_v13 = vpop.f32.mrb[95].mxu0 }
 0x1d7   :  { %1252 = vst.msk [vmem:[%s2085_s3 + $0x150] sm:$0xff] %vm1209_vm1, %v1171_v10 }
 0x1d8   :  { %v860_v14 = vpop.f32.mrb[86].mxu1  ;;  %v1200_v17 = vpop.f32.mrb[96].mxu0 }
 0x1d9   :  { %v1176_v15 = vadd.f32 %v1175_v55, %v860_v14  ;;  %v862_v16 = vpop.f32.mrb[87].mxu1  ;;  %v1202_v18 = vpop.f32.mrb[97].mxu0 }
 0x1db   :  { %1253 = vst.msk [vmem:[%s2085_s3 + $0x158] sm:$0xff] %vm1209_vm1, %v1176_v15 }
 0x1dc   :  { %v865_v19 = vpop.f32.mrb[88].mxu1  ;;  %v1205_v22 = vpop.f32.mrb[98].mxu0 }
 0x1dd   :  { %v1181_v20 = vadd.f32 %v1180_v60, %v865_v19  ;;  %v867_v21 = vpop.f32.mrb[89].mxu1  ;;  %v1207_v23 = vpop.f32.mrb[99].mxu0 }
 0x1df   :  { %1254 = vst.msk [vmem:[%s2085_s3 + $0x160] sm:$0xff] %vm1209_vm1, %v1181_v20 }
 0x1e0   :  { %v870_v24 = vpop.f32.mrb[90].mxu1 }
 0x1e1   :  { %v1186_v25 = vadd.f32 %v1185_v2, %v870_v24  ;;  %v872_v26 = vpop.f32.mrb[91].mxu1 }
 0x1e3   :  { %1255 = vst.msk [vmem:[%s2085_s3 + $0x168] sm:$0xff] %vm1209_vm1, %v1186_v25 }
 0x1e4   :  { %v875_v27 = vpop.f32.mrb[92].mxu1 }
 0x1e5   :  { %v1191_v28 = vadd.f32 %v1190_v7, %v875_v27  ;;  %v877_v29 = vpop.f32.mrb[93].mxu1 }
 0x1e7   :  { %1256 = vst.msk [vmem:[%s2085_s3 + $0x170] sm:$0xff] %vm1209_vm1, %v1191_v28 }
 0x1e8   :  { %v880_v30 = vpop.f32.mrb[94].mxu1 }
 0x1e9   :  { %v1196_v31 = vadd.f32 %v1195_v12, %v880_v30  ;;  %v882_v32 = vpop.f32.mrb[95].mxu1 }
 0x1eb   :  { %1257 = vst.msk [vmem:[%s2085_s3 + $0x178] sm:$0xff] %vm1209_vm1, %v1196_v31 }
 0x1ec   :  { %v885_v33 = vpop.f32.mrb[96].mxu1 }
 0x1ed   :  { %v1201_v34 = vadd.f32 %v1200_v17, %v885_v33  ;;  %v887_v35 = vpop.f32.mrb[97].mxu1 }
 0x1ef   :  { %1258 = vst.msk [vmem:[%s2085_s3 + $0x180] sm:$0xff] %vm1209_vm1, %v1201_v34 }
 0x1f0   :  { %v890_v36 = vpop.f32.mrb[98].mxu1 }
 0x1f1   :  { %v1206_v37 = vadd.f32 %v1205_v22, %v890_v36  ;;  %v892_v38 = vpop.f32.mrb[99].mxu1 }
 0x1f3   :  { %1259 = vst.msk [vmem:[%s2085_s3 + $0x188] sm:$0xff] %vm1209_vm1, %v1206_v37 }
 0x1f4   :  { %1264 = vsyncpa [#allocation3], 1 }

</bundles_post_ra>
